<compile_context>
chip_gen: v7x
topology: tpu7x:2x2x1
jax: 0.10.0
libtpu: 0.0.40
codegen_flags: <defaults>
</compile_context>

<pallas_src>
import functools

import jax
import jax.numpy as jnp
from jax.experimental import pallas as pl
from jax.experimental.pallas import tpu as pltpu


def _round_up(v, m):
    return ((v + m - 1) // m) * m


# ------------------------------ fused Pallas kernel ------------------------------

def _resblock_kernel(x_ref, w1_ref, s1_ref, t1_ref, w2_ref, s2_ref, t2_ref,
                     wsc_ref, ssc_ref, tsc_ref, o_ref, h1_scr, *, stride, ho, wo):
    """Whole ResBlock for one batch image.

    x_ref  : (s, s, Hq, Wq, Cin_p)  row+col phase-decomposed zero-padded input (f32)
             x_ref[rp, cp_, rq, cq, c] == x_pad[rq*s + rp, cq*s + cp_, c]
    w1_ref : (9*Cin_p, Cp)   conv1 weights, taps stacked along K (tap = kh*3 + kw)
    w2_ref : (9*Cp,    Cp)   conv2 weights, taps stacked along K
    wsc_ref: (Cin_p,   Cp)   1x1 shortcut weights
    s*/t*  : (1, Cp)         folded BatchNorm scale / shift (f32)
    o_ref  : (Ho, Wo, Cp)    bf16 output block
    h1_scr : (Ho+2, Wo+2, Cp) f32 VMEM scratch: ReLU(BN1(conv1)) with zero border
    """
    s = stride
    m = ho * wo

    def x_tap(kh, kw):
        # x_pad[ho_i*s + kh, wo_i*s + kw, :] for every output pixel -> (Ho, Wo, Cin_p)
        return x_ref[kh % s, kw % s,
                     kh // s: kh // s + ho,
                     kw // s: kw // s + wo, :]

    # ---- conv1 (3x3, stride s) + BN1 + ReLU : single merged-K MXU matmul ----
    lhs1 = jnp.concatenate(
        [x_tap(kh, kw).reshape(m, -1).astype(jnp.bfloat16)
         for kh in range(3) for kw in range(3)],
        axis=-1)                                                     # (M, 9*Cin_p)
    acc1 = jnp.dot(lhs1, w1_ref[...], preferred_element_type=jnp.float32)
    h1 = jnp.maximum(acc1 * s1_ref[...] + t1_ref[...], 0.0)         # (M, Cp) f32

    # ---- keep h1 in VMEM (zero spatial border) for conv2: no HBM round trip ----
    h1_scr[...] = jnp.zeros_like(h1_scr)
    h1_scr[1:1 + ho, 1:1 + wo, :] = h1.reshape(ho, wo, -1)

    # ---- conv2 (3x3, stride 1) + BN2 + ReLU : single merged-K MXU matmul ----
    lhs2 = jnp.concatenate(
        [h1_scr[kh:kh + ho, kw:kw + wo, :].reshape(m, -1).astype(jnp.bfloat16)
         for kh in range(3) for kw in range(3)],
        axis=-1)                                                     # (M, 9*Cp)
    acc2 = jnp.dot(lhs2, w2_ref[...], preferred_element_type=jnp.float32)
    res = jnp.maximum(acc2 * s2_ref[...] + t2_ref[...], 0.0)

    # ---- fused 1x1/stride shortcut + BN, then residual add (no ReLU after sum) ----
    xc = x_ref[1 % s, 1 % s, 1 // s: 1 // s + ho, 1 // s: 1 // s + wo, :]
    sc = jnp.dot(xc.reshape(m, -1).astype(jnp.bfloat16), wsc_ref[...],
                 preferred_element_type=jnp.float32)
    sc = sc * ssc_ref[...] + tsc_ref[...]

    o_ref[...] = (res + sc).reshape(ho, wo, -1).astype(o_ref.dtype)


# ------------------------------ glue (JAX wrapper) ------------------------------

def _fold_bn(conv_bias, gamma, beta, mean, var, eps=1e-5):
    """Fold conv bias + eval-mode BatchNorm into per-channel scale/shift."""
    scale = gamma / jnp.sqrt(var + eps)
    shift = (conv_bias - mean) * scale + beta
    return scale, shift


def _pad_axis(a, axis, target):
    pad = [(0, 0)] * a.ndim
    pad[axis] = (0, target - a.shape[axis])
    return jnp.pad(a, pad)


def resblock_forward(x_nchw, params, stride):
    x = jnp.transpose(x_nchw, (0, 2, 3, 1))                  # NCHW -> NHWC
    n, h, w, cin = x.shape
    cout = params["w1"].shape[0]
    s = stride
    cp = _round_up(cout, 128)                                # lane-dense out channels
    cip = _round_up(cin, 128)                                # lane-dense in channels
    ho = (h + 2 - 3) // s + 1
    wo = (w + 2 - 3) // s + 1

    # Phase counts: group index q goes up to (out-1) + max_kh(kh // s) = (out-1) + 2//s,
    # and s*q groups must also cover the whole zero-padded extent (h+2 / w+2).
    hq = max(pl.cdiv(h + 2, s), ho + 2 // s)
    wq = max(pl.cdiv(w + 2, s), wo + 2 // s)
    hr, wr = s * hq, s * wq

    # Zero-padded, row+column phase-decomposed input (f32, channels padded to Cin_p).
    x_pad = jnp.pad(x, ((0, 0), (1, hr - h - 1), (1, wr - w - 1), (0, cip - cin)))
    # x_ph[rp, cp_, b, rq, cq, c] = x_pad[b, rq*s + rp, cq*s + cp_, c]
    x_ph = x_pad.reshape(n, hq, s, wq, s, cip).transpose(2, 4, 0, 1, 3, 5)

    # Folded BN affines, channel-padded with zeros (pad channels stay exactly 0).
    def prep_affine(bias, g, b, mn, v):
        sc, sh = _fold_bn(bias, g, b, mn, v)
        sc = _pad_axis(sc, 0, cp).reshape(1, cp).astype(jnp.float32)
        sh = _pad_axis(sh, 0, cp).reshape(1, cp).astype(jnp.float32)
        return sc, sh

    s1, t1 = prep_affine(params["b1"], params["bn1_g"], params["bn1_b"],
                         params["bn1_m"], params["bn1_v"])
    s2, t2 = prep_affine(params["b2"], params["bn2_g"], params["bn2_b"],
                         params["bn2_m"], params["bn2_v"])
    ssc, tsc = prep_affine(params["bsc"], params["bnsc_g"], params["bnsc_b"],
                           params["bnsc_m"], params["bnsc_v"])

    # Conv weights as tap-stacked matmul operands (tap = kh*3 + kw), channel-padded, bf16.
    w1t = jnp.transpose(params["w1"], (2, 3, 1, 0))          # (3,3,Cin,Cout)
    w1t = jnp.pad(w1t, ((0, 0), (0, 0), (0, cip - cin), (0, cp - cout)))
    w1s = w1t.reshape(9 * cip, cp).astype(jnp.bfloat16)

    w2t = jnp.transpose(params["w2"], (2, 3, 1, 0))          # (3,3,Cout,Cout)
    w2t = jnp.pad(w2t, ((0, 0), (0, 0), (0, cp - cout), (0, cp - cout)))
    w2s = w2t.reshape(9 * cp, cp).astype(jnp.bfloat16)

    wsct = params["wsc"][:, :, 0, 0].T                       # (Cin, Cout)
    wsct = jnp.pad(wsct, ((0, cip - cin), (0, cp - cout))).astype(jnp.bfloat16)

    kernel = functools.partial(_resblock_kernel, stride=s, ho=ho, wo=wo)
    vspec = pl.BlockSpec((1, cp), lambda b: (0, 0))          # grid-constant (1,Cp) vectors

    out = pl.pallas_call(
        kernel,
        grid=(n,),
        in_specs=[
            pl.BlockSpec((s, s, None, hq, wq, cip), lambda b: (0, 0, b, 0, 0, 0)),
            pl.BlockSpec((9 * cip, cp), lambda b: (0, 0)),
            vspec, vspec,
            pl.BlockSpec((9 * cp, cp), lambda b: (0, 0)),
            vspec, vspec,
            pl.BlockSpec((cip, cp), lambda b: (0, 0)),
            vspec, vspec,
        ],
        out_specs=pl.BlockSpec((None, ho, wo, cp), lambda b: (b, 0, 0, 0)),
        out_shape=jax.ShapeDtypeStruct((n, ho, wo, cp), jnp.bfloat16),
        scratch_shapes=[pltpu.VMEM((ho + 2, wo + 2, cp), jnp.float32)],
        compiler_params=pltpu.CompilerParams(
            dimension_semantics=("parallel",)),
    )(x_ph, w1s, s1, t1, w2s, s2, t2, wsct, ssc, tsc)

    out = out[:, :, :, :cout].astype(jnp.float32)
    return jnp.transpose(out, (0, 3, 1, 2))                  # NHWC -> NCHW


# ------------------------------ f32 reference (for self-check) ------------------------------

def resblock_reference(x_nchw, params, stride):
    dn = ("NCHW", "OIHW", "NCHW")

    def conv(x, wgt, b, st, pad):
        y = jax.lax.conv_general_dilated(
            x, wgt, (st, st), [(pad, pad), (pad, pad)], dimension_numbers=dn,
            precision=jax.lax.Precision.HIGHEST)
        return y + b.reshape(1, -1, 1, 1)

    def bn(x, g, b, m, v, eps=1e-5):
        shp = (1, -1, 1, 1)
        return ((x - m.reshape(shp)) / jnp.sqrt(v.reshape(shp) + eps)
                * g.reshape(shp) + b.reshape(shp))

    hh = jax.nn.relu(bn(conv(x_nchw, params["w1"], params["b1"], stride, 1),
                        params["bn1_g"], params["bn1_b"], params["bn1_m"], params["bn1_v"]))
    hh = jax.nn.relu(bn(conv(hh, params["w2"], params["b2"], 1, 1),
                        params["bn2_g"], params["bn2_b"], params["bn2_m"], params["bn2_v"]))
    sc = bn(conv(x_nchw, params["wsc"], params["bsc"], stride, 0),
            params["bnsc_g"], params["bnsc_b"], params["bnsc_m"], params["bnsc_v"])
    return hh + sc


# ------------------------------ deterministic params ------------------------------

def init_params(key, in_ch, out_ch):
    keys = jax.random.split(key, 20)

    def u(k, shape, fan_in):
        bound = 1.0 / (fan_in ** 0.5)
        return jax.random.uniform(k, shape, jnp.float32, -bound, bound)

    p = {}
    p["w1"] = u(keys[0], (out_ch, in_ch, 3, 3), in_ch * 9)
    p["b1"] = u(keys[1], (out_ch,), in_ch * 9)
    p["w2"] = u(keys[2], (out_ch, out_ch, 3, 3), out_ch * 9)
    p["b2"] = u(keys[3], (out_ch,), out_ch * 9)
    p["wsc"] = u(keys[4], (out_ch, in_ch, 1, 1), in_ch)
    p["bsc"] = u(keys[5], (out_ch,), in_ch)
    for i, name in enumerate(("bn1", "bn2", "bnsc")):
        p[f"{name}_g"] = 1.0 + 0.1 * jax.random.normal(keys[6 + 4 * i], (out_ch,))
        p[f"{name}_b"] = 0.1 * jax.random.normal(keys[7 + 4 * i], (out_ch,))
        p[f"{name}_m"] = 0.1 * jax.random.normal(keys[8 + 4 * i], (out_ch,))
        p[f"{name}_v"] = 1.0 + 0.1 * jnp.abs(jax.random.normal(keys[9 + 4 * i], (out_ch,)))
    return p


if __name__ == "__main__":
    in_ch, out_ch, stride = 4, 8, 2
    N, H, W = 2, 16, 16

    key = jax.random.PRNGKey(0)
    kx, kp = jax.random.split(key)
    x = jax.random.normal(kx, (N, in_ch, H, W), jnp.float32)   # NCHW, like PyTorch
    params = init_params(kp, in_ch, out_ch)

    fwd = jax.jit(functools.partial(resblock_forward, stride=stride))
    out = fwd(x, params)
    jax.block_until_ready(out)

    Ho = (H + 2 - 3) // stride + 1
    Wo = (W + 2 - 3) // stride + 1
    assert out.shape == (N, out_ch, Ho, Wo), out.shape
    assert jnp.isfinite(out).all()

    # loose tolerance: kernel uses bf16 MXU operands / bf16 writeback, f32 accumulation
    ref = resblock_reference(x, params, stride)
    assert jnp.allclose(out, ref, rtol=1e-1, atol=1e-1), float(jnp.abs(out - ref).max())

    print("KERNEL_OK")
</pallas_src>

<mosaic_0001>
module attributes {stable_mosaic.version = 11 : i64} {
  func.func @_resblock_kernel(%arg0: i32, %arg1: memref<2x2x1x9x9x128xf32, #tpu.memory_space<vmem>>, %arg2: memref<1152x128xbf16, #tpu.memory_space<vmem>>, %arg3: memref<1x128xf32, #tpu.memory_space<vmem>>, %arg4: memref<1x128xf32, #tpu.memory_space<vmem>>, %arg5: memref<1152x128xbf16, #tpu.memory_space<vmem>>, %arg6: memref<1x128xf32, #tpu.memory_space<vmem>>, %arg7: memref<1x128xf32, #tpu.memory_space<vmem>>, %arg8: memref<128x128xbf16, #tpu.memory_space<vmem>>, %arg9: memref<1x128xf32, #tpu.memory_space<vmem>>, %arg10: memref<1x128xf32, #tpu.memory_space<vmem>>, %arg11: memref<1x8x8x128xbf16, #tpu.memory_space<vmem>>, %arg12: memref<10x10x128xf32, #tpu.memory_space<vmem>>) attributes {dimension_semantics = [#tpu.dimension_semantics<parallel>], iteration_bounds = array<i64: 2>, scalar_prefetch = 0 : i64, scratch_operands = 1 : i64, tpu.core_type = #tpu.core_type<tc>, window_params = [{transform_indices = @transform_0, window_bounds = array<i64: 2, 2, 1, 9, 9, 128>}, {pipeline_mode = #tpu.pipeline_mode<synchronous>, transform_indices = @transform_1, window_bounds = array<i64: 1152, 128>}, {pipeline_mode = #tpu.pipeline_mode<synchronous>, transform_indices = @transform_2, window_bounds = array<i64: 1, 128>}, {pipeline_mode = #tpu.pipeline_mode<synchronous>, transform_indices = @transform_3, window_bounds = array<i64: 1, 128>}, {pipeline_mode = #tpu.pipeline_mode<synchronous>, transform_indices = @transform_4, window_bounds = array<i64: 1152, 128>}, {pipeline_mode = #tpu.pipeline_mode<synchronous>, transform_indices = @transform_5, window_bounds = array<i64: 1, 128>}, {pipeline_mode = #tpu.pipeline_mode<synchronous>, transform_indices = @transform_6, window_bounds = array<i64: 1, 128>}, {pipeline_mode = #tpu.pipeline_mode<synchronous>, transform_indices = @transform_7, window_bounds = array<i64: 128, 128>}, {pipeline_mode = #tpu.pipeline_mode<synchronous>, transform_indices = @transform_8, window_bounds = array<i64: 1, 128>}, {pipeline_mode = #tpu.pipeline_mode<synchronous>, transform_indices = @transform_9, window_bounds = array<i64: 1, 128>}, {transform_indices = @transform_10, window_bounds = array<i64: 1, 8, 8, 128>}]} {
    %c0 = arith.constant 0 : index
    %c0_0 = arith.constant 0 : index
    %c0_1 = arith.constant 0 : index
    %c0_2 = arith.constant 0 : index
    %c0_3 = arith.constant 0 : index
    %c0_4 = arith.constant 0 : index
    %0 = vector.load %arg1[%c0, %c0_0, %c0_1, %c0_2, %c0_3, %c0_4] : memref<2x2x1x9x9x128xf32, #tpu.memory_space<vmem>>, vector<1x1x1x8x8x128xf32>
    %1 = vector.shape_cast %0 : vector<1x1x1x8x8x128xf32> to vector<8x8x128xf32>
    %2 = vector.shape_cast %1 : vector<8x8x128xf32> to vector<64x128xf32>
    %3 = arith.truncf %2 : vector<64x128xf32> to vector<64x128xbf16>
    %c0_5 = arith.constant 0 : index
    %c1 = arith.constant 1 : index
    %c0_6 = arith.constant 0 : index
    %c0_7 = arith.constant 0 : index
    %c0_8 = arith.constant 0 : index
    %c0_9 = arith.constant 0 : index
    %4 = vector.load %arg1[%c0_5, %c1, %c0_6, %c0_7, %c0_8, %c0_9] : memref<2x2x1x9x9x128xf32, #tpu.memory_space<vmem>>, vector<1x1x1x8x8x128xf32>
    %5 = vector.shape_cast %4 : vector<1x1x1x8x8x128xf32> to vector<8x8x128xf32>
    %6 = vector.shape_cast %5 : vector<8x8x128xf32> to vector<64x128xf32>
    %7 = arith.truncf %6 : vector<64x128xf32> to vector<64x128xbf16>
    %c0_10 = arith.constant 0 : index
    %c0_11 = arith.constant 0 : index
    %c0_12 = arith.constant 0 : index
    %c0_13 = arith.constant 0 : index
    %c1_14 = arith.constant 1 : index
    %c0_15 = arith.constant 0 : index
    %8 = vector.load %arg1[%c0_10, %c0_11, %c0_12, %c0_13, %c1_14, %c0_15] : memref<2x2x1x9x9x128xf32, #tpu.memory_space<vmem>>, vector<1x1x1x8x8x128xf32>
    %9 = vector.shape_cast %8 : vector<1x1x1x8x8x128xf32> to vector<8x8x128xf32>
    %10 = vector.shape_cast %9 : vector<8x8x128xf32> to vector<64x128xf32>
    %11 = arith.truncf %10 : vector<64x128xf32> to vector<64x128xbf16>
    %c1_16 = arith.constant 1 : index
    %c0_17 = arith.constant 0 : index
    %c0_18 = arith.constant 0 : index
    %c0_19 = arith.constant 0 : index
    %c0_20 = arith.constant 0 : index
    %c0_21 = arith.constant 0 : index
    %12 = vector.load %arg1[%c1_16, %c0_17, %c0_18, %c0_19, %c0_20, %c0_21] : memref<2x2x1x9x9x128xf32, #tpu.memory_space<vmem>>, vector<1x1x1x8x8x128xf32>
    %13 = vector.shape_cast %12 : vector<1x1x1x8x8x128xf32> to vector<8x8x128xf32>
    %14 = vector.shape_cast %13 : vector<8x8x128xf32> to vector<64x128xf32>
    %15 = arith.truncf %14 : vector<64x128xf32> to vector<64x128xbf16>
    %c1_22 = arith.constant 1 : index
    %c1_23 = arith.constant 1 : index
    %c0_24 = arith.constant 0 : index
    %c0_25 = arith.constant 0 : index
    %c0_26 = arith.constant 0 : index
    %c0_27 = arith.constant 0 : index
    %16 = vector.load %arg1[%c1_22, %c1_23, %c0_24, %c0_25, %c0_26, %c0_27] : memref<2x2x1x9x9x128xf32, #tpu.memory_space<vmem>>, vector<1x1x1x8x8x128xf32>
    %17 = vector.shape_cast %16 : vector<1x1x1x8x8x128xf32> to vector<8x8x128xf32>
    %18 = vector.shape_cast %17 : vector<8x8x128xf32> to vector<64x128xf32>
    %19 = arith.truncf %18 : vector<64x128xf32> to vector<64x128xbf16>
    %c1_28 = arith.constant 1 : index
    %c0_29 = arith.constant 0 : index
    %c0_30 = arith.constant 0 : index
    %c0_31 = arith.constant 0 : index
    %c1_32 = arith.constant 1 : index
    %c0_33 = arith.constant 0 : index
    %20 = vector.load %arg1[%c1_28, %c0_29, %c0_30, %c0_31, %c1_32, %c0_33] : memref<2x2x1x9x9x128xf32, #tpu.memory_space<vmem>>, vector<1x1x1x8x8x128xf32>
    %21 = vector.shape_cast %20 : vector<1x1x1x8x8x128xf32> to vector<8x8x128xf32>
    %22 = vector.shape_cast %21 : vector<8x8x128xf32> to vector<64x128xf32>
    %23 = arith.truncf %22 : vector<64x128xf32> to vector<64x128xbf16>
    %c0_34 = arith.constant 0 : index
    %c0_35 = arith.constant 0 : index
    %c0_36 = arith.constant 0 : index
    %c1_37 = arith.constant 1 : index
    %c0_38 = arith.constant 0 : index
    %c0_39 = arith.constant 0 : index
    %24 = vector.load %arg1[%c0_34, %c0_35, %c0_36, %c1_37, %c0_38, %c0_39] : memref<2x2x1x9x9x128xf32, #tpu.memory_space<vmem>>, vector<1x1x1x8x8x128xf32>
    %25 = vector.shape_cast %24 : vector<1x1x1x8x8x128xf32> to vector<8x8x128xf32>
    %26 = vector.shape_cast %25 : vector<8x8x128xf32> to vector<64x128xf32>
    %27 = arith.truncf %26 : vector<64x128xf32> to vector<64x128xbf16>
    %c0_40 = arith.constant 0 : index
    %c1_41 = arith.constant 1 : index
    %c0_42 = arith.constant 0 : index
    %c1_43 = arith.constant 1 : index
    %c0_44 = arith.constant 0 : index
    %c0_45 = arith.constant 0 : index
    %28 = vector.load %arg1[%c0_40, %c1_41, %c0_42, %c1_43, %c0_44, %c0_45] : memref<2x2x1x9x9x128xf32, #tpu.memory_space<vmem>>, vector<1x1x1x8x8x128xf32>
    %29 = vector.shape_cast %28 : vector<1x1x1x8x8x128xf32> to vector<8x8x128xf32>
    %30 = vector.shape_cast %29 : vector<8x8x128xf32> to vector<64x128xf32>
    %31 = arith.truncf %30 : vector<64x128xf32> to vector<64x128xbf16>
    %c0_46 = arith.constant 0 : index
    %c0_47 = arith.constant 0 : index
    %c0_48 = arith.constant 0 : index
    %c1_49 = arith.constant 1 : index
    %c1_50 = arith.constant 1 : index
    %c0_51 = arith.constant 0 : index
    %32 = vector.load %arg1[%c0_46, %c0_47, %c0_48, %c1_49, %c1_50, %c0_51] : memref<2x2x1x9x9x128xf32, #tpu.memory_space<vmem>>, vector<1x1x1x8x8x128xf32>
    %33 = vector.shape_cast %32 : vector<1x1x1x8x8x128xf32> to vector<8x8x128xf32>
    %34 = vector.shape_cast %33 : vector<8x8x128xf32> to vector<64x128xf32>
    %35 = arith.truncf %34 : vector<64x128xf32> to vector<64x128xbf16>
    %36 = tpu.concatenate %3, %7, %11, %15, %19, %23, %27, %31, %35 in 1 : vector<64x128xbf16>, vector<64x128xbf16>, vector<64x128xbf16>, vector<64x128xbf16>, vector<64x128xbf16>, vector<64x128xbf16>, vector<64x128xbf16>, vector<64x128xbf16>, vector<64x128xbf16> -> vector<64x1152xbf16>
    %c0_52 = arith.constant 0 : index
    %c0_53 = arith.constant 0 : index
    %37 = vector.load %arg2[%c0_52, %c0_53] : memref<1152x128xbf16, #tpu.memory_space<vmem>>, vector<1152x128xbf16>
    %cst = arith.constant dense<0.000000e+00> : vector<64x128xf32>
    %38 = tpu.matmul %36, %37, %cst {dimension_numbers = #tpu.dot_dimension_numbers<[1], [0], [0], [1], [0, 0, 1, 1], [], []>} : vector<64x1152xbf16>, vector<1152x128xbf16>, vector<64x128xf32> -> vector<64x128xf32>
    %c0_54 = arith.constant 0 : index
    %c0_55 = arith.constant 0 : index
    %39 = vector.load %arg3[%c0_54, %c0_55] : memref<1x128xf32, #tpu.memory_space<vmem>>, vector<1x128xf32>
    %40 = vector.broadcast %39 : vector<1x128xf32> to vector<64x128xf32>
    %41 = arith.mulf %38, %40 : vector<64x128xf32>
    %c0_56 = arith.constant 0 : index
    %c0_57 = arith.constant 0 : index
    %42 = vector.load %arg4[%c0_56, %c0_57] : memref<1x128xf32, #tpu.memory_space<vmem>>, vector<1x128xf32>
    %43 = vector.broadcast %42 : vector<1x128xf32> to vector<64x128xf32>
    %44 = arith.addf %41, %43 : vector<64x128xf32>
    %cst_58 = arith.constant 0.000000e+00 : f32
    %45 = vector.broadcast %cst_58 : f32 to vector<64x128xf32>
    %46 = arith.maximumf %44, %45 : vector<64x128xf32>
    %cst_59 = arith.constant 0.000000e+00 : f32
    %47 = vector.broadcast %cst_59 : f32 to vector<10x10x128xf32>
    %c0_60 = arith.constant 0 : index
    %c0_61 = arith.constant 0 : index
    %c0_62 = arith.constant 0 : index
    %48 = vector.load %arg12[%c0_60, %c0_61, %c0_62] : memref<10x10x128xf32, #tpu.memory_space<vmem>>, vector<10x10x128xf32>
    tpu.vector_store %arg12[%c0_60, %c0_61, %c0_62], %47 {strides = array<i32>} : memref<10x10x128xf32, #tpu.memory_space<vmem>>, vector<10x10x128xf32>,
    %49 = vector.shape_cast %46 : vector<64x128xf32> to vector<8x8x128xf32>
    %c1_63 = arith.constant 1 : index
    %c1_64 = arith.constant 1 : index
    %c0_65 = arith.constant 0 : index
    %50 = vector.load %arg12[%c1_63, %c1_64, %c0_65] : memref<10x10x128xf32, #tpu.memory_space<vmem>>, vector<8x8x128xf32>
    tpu.vector_store %arg12[%c1_63, %c1_64, %c0_65], %49 {strides = array<i32>} : memref<10x10x128xf32, #tpu.memory_space<vmem>>, vector<8x8x128xf32>,
    %c0_66 = arith.constant 0 : index
    %c0_67 = arith.constant 0 : index
    %c0_68 = arith.constant 0 : index
    %51 = vector.load %arg12[%c0_66, %c0_67, %c0_68] : memref<10x10x128xf32, #tpu.memory_space<vmem>>, vector<8x8x128xf32>
    %52 = vector.shape_cast %51 : vector<8x8x128xf32> to vector<64x128xf32>
    %53 = arith.truncf %52 : vector<64x128xf32> to vector<64x128xbf16>
    %c0_69 = arith.constant 0 : index
    %c1_70 = arith.constant 1 : index
    %c0_71 = arith.constant 0 : index
    %54 = vector.load %arg12[%c0_69, %c1_70, %c0_71] : memref<10x10x128xf32, #tpu.memory_space<vmem>>, vector<8x8x128xf32>
    %55 = vector.shape_cast %54 : vector<8x8x128xf32> to vector<64x128xf32>
    %56 = arith.truncf %55 : vector<64x128xf32> to vector<64x128xbf16>
    %c0_72 = arith.constant 0 : index
    %c2 = arith.constant 2 : index
    %c0_73 = arith.constant 0 : index
    %57 = vector.load %arg12[%c0_72, %c2, %c0_73] : memref<10x10x128xf32, #tpu.memory_space<vmem>>, vector<8x8x128xf32>
    %58 = vector.shape_cast %57 : vector<8x8x128xf32> to vector<64x128xf32>
    %59 = arith.truncf %58 : vector<64x128xf32> to vector<64x128xbf16>
    %c1_74 = arith.constant 1 : index
    %c0_75 = arith.constant 0 : index
    %c0_76 = arith.constant 0 : index
    %60 = vector.load %arg12[%c1_74, %c0_75, %c0_76] : memref<10x10x128xf32, #tpu.memory_space<vmem>>, vector<8x8x128xf32>
    %61 = vector.shape_cast %60 : vector<8x8x128xf32> to vector<64x128xf32>
    %62 = arith.truncf %61 : vector<64x128xf32> to vector<64x128xbf16>
    %c1_77 = arith.constant 1 : index
    %c1_78 = arith.constant 1 : index
    %c0_79 = arith.constant 0 : index
    %63 = vector.load %arg12[%c1_77, %c1_78, %c0_79] : memref<10x10x128xf32, #tpu.memory_space<vmem>>, vector<8x8x128xf32>
    %64 = vector.shape_cast %63 : vector<8x8x128xf32> to vector<64x128xf32>
    %65 = arith.truncf %64 : vector<64x128xf32> to vector<64x128xbf16>
    %c1_80 = arith.constant 1 : index
    %c2_81 = arith.constant 2 : index
    %c0_82 = arith.constant 0 : index
    %66 = vector.load %arg12[%c1_80, %c2_81, %c0_82] : memref<10x10x128xf32, #tpu.memory_space<vmem>>, vector<8x8x128xf32>
    %67 = vector.shape_cast %66 : vector<8x8x128xf32> to vector<64x128xf32>
    %68 = arith.truncf %67 : vector<64x128xf32> to vector<64x128xbf16>
    %c2_83 = arith.constant 2 : index
    %c0_84 = arith.constant 0 : index
    %c0_85 = arith.constant 0 : index
    %69 = vector.load %arg12[%c2_83, %c0_84, %c0_85] : memref<10x10x128xf32, #tpu.memory_space<vmem>>, vector<8x8x128xf32>
    %70 = vector.shape_cast %69 : vector<8x8x128xf32> to vector<64x128xf32>
    %71 = arith.truncf %70 : vector<64x128xf32> to vector<64x128xbf16>
    %c2_86 = arith.constant 2 : index
    %c1_87 = arith.constant 1 : index
    %c0_88 = arith.constant 0 : index
    %72 = vector.load %arg12[%c2_86, %c1_87, %c0_88] : memref<10x10x128xf32, #tpu.memory_space<vmem>>, vector<8x8x128xf32>
    %73 = vector.shape_cast %72 : vector<8x8x128xf32> to vector<64x128xf32>
    %74 = arith.truncf %73 : vector<64x128xf32> to vector<64x128xbf16>
    %c2_89 = arith.constant 2 : index
    %c2_90 = arith.constant 2 : index
    %c0_91 = arith.constant 0 : index
    %75 = vector.load %arg12[%c2_89, %c2_90, %c0_91] : memref<10x10x128xf32, #tpu.memory_space<vmem>>, vector<8x8x128xf32>
    %76 = vector.shape_cast %75 : vector<8x8x128xf32> to vector<64x128xf32>
    %77 = arith.truncf %76 : vector<64x128xf32> to vector<64x128xbf16>
    %78 = tpu.concatenate %53, %56, %59, %62, %65, %68, %71, %74, %77 in 1 : vector<64x128xbf16>, vector<64x128xbf16>, vector<64x128xbf16>, vector<64x128xbf16>, vector<64x128xbf16>, vector<64x128xbf16>, vector<64x128xbf16>, vector<64x128xbf16>, vector<64x128xbf16> -> vector<64x1152xbf16>
    %c0_92 = arith.constant 0 : index
    %c0_93 = arith.constant 0 : index
    %79 = vector.load %arg5[%c0_92, %c0_93] : memref<1152x128xbf16, #tpu.memory_space<vmem>>, vector<1152x128xbf16>
    %cst_94 = arith.constant dense<0.000000e+00> : vector<64x128xf32>
    %80 = tpu.matmul %78, %79, %cst_94 {dimension_numbers = #tpu.dot_dimension_numbers<[1], [0], [0], [1], [0, 0, 1, 1], [], []>} : vector<64x1152xbf16>, vector<1152x128xbf16>, vector<64x128xf32> -> vector<64x128xf32>
    %c0_95 = arith.constant 0 : index
    %c0_96 = arith.constant 0 : index
    %81 = vector.load %arg6[%c0_95, %c0_96] : memref<1x128xf32, #tpu.memory_space<vmem>>, vector<1x128xf32>
    %82 = vector.broadcast %81 : vector<1x128xf32> to vector<64x128xf32>
    %83 = arith.mulf %80, %82 : vector<64x128xf32>
    %c0_97 = arith.constant 0 : index
    %c0_98 = arith.constant 0 : index
    %84 = vector.load %arg7[%c0_97, %c0_98] : memref<1x128xf32, #tpu.memory_space<vmem>>, vector<1x128xf32>
    %85 = vector.broadcast %84 : vector<1x128xf32> to vector<64x128xf32>
    %86 = arith.addf %83, %85 : vector<64x128xf32>
    %cst_99 = arith.constant 0.000000e+00 : f32
    %87 = vector.broadcast %cst_99 : f32 to vector<64x128xf32>
    %88 = arith.maximumf %86, %87 : vector<64x128xf32>
    %c1_100 = arith.constant 1 : index
    %c1_101 = arith.constant 1 : index
    %c0_102 = arith.constant 0 : index
    %c0_103 = arith.constant 0 : index
    %c0_104 = arith.constant 0 : index
    %c0_105 = arith.constant 0 : index
    %89 = vector.load %arg1[%c1_100, %c1_101, %c0_102, %c0_103, %c0_104, %c0_105] : memref<2x2x1x9x9x128xf32, #tpu.memory_space<vmem>>, vector<1x1x1x8x8x128xf32>
    %90 = vector.shape_cast %89 : vector<1x1x1x8x8x128xf32> to vector<8x8x128xf32>
    %91 = vector.shape_cast %90 : vector<8x8x128xf32> to vector<64x128xf32>
    %92 = arith.truncf %91 : vector<64x128xf32> to vector<64x128xbf16>
    %c0_106 = arith.constant 0 : index
    %c0_107 = arith.constant 0 : index
    %93 = vector.load %arg8[%c0_106, %c0_107] : memref<128x128xbf16, #tpu.memory_space<vmem>>, vector<128x128xbf16>
    %cst_108 = arith.constant dense<0.000000e+00> : vector<64x128xf32>
    %94 = tpu.matmul %92, %93, %cst_108 {dimension_numbers = #tpu.dot_dimension_numbers<[1], [0], [0], [1], [0, 0, 1, 1], [], []>} : vector<64x128xbf16>, vector<128x128xbf16>, vector<64x128xf32> -> vector<64x128xf32>
    %c0_109 = arith.constant 0 : index
    %c0_110 = arith.constant 0 : index
    %95 = vector.load %arg9[%c0_109, %c0_110] : memref<1x128xf32, #tpu.memory_space<vmem>>, vector<1x128xf32>
    %96 = vector.broadcast %95 : vector<1x128xf32> to vector<64x128xf32>
    %97 = arith.mulf %94, %96 : vector<64x128xf32>
    %c0_111 = arith.constant 0 : index
    %c0_112 = arith.constant 0 : index
    %98 = vector.load %arg10[%c0_111, %c0_112] : memref<1x128xf32, #tpu.memory_space<vmem>>, vector<1x128xf32>
    %99 = vector.broadcast %98 : vector<1x128xf32> to vector<64x128xf32>
    %100 = arith.addf %97, %99 : vector<64x128xf32>
    %101 = arith.addf %88, %100 : vector<64x128xf32>
    %102 = vector.shape_cast %101 : vector<64x128xf32> to vector<8x8x128xf32>
    %103 = arith.truncf %102 : vector<8x8x128xf32> to vector<8x8x128xbf16>
    %c0_113 = arith.constant 0 : index
    %c0_114 = arith.constant 0 : index
    %c0_115 = arith.constant 0 : index
    %c0_116 = arith.constant 0 : index
    %104 = vector.load %arg11[%c0_113, %c0_114, %c0_115, %c0_116] : memref<1x8x8x128xbf16, #tpu.memory_space<vmem>>, vector<1x8x8x128xbf16>
    %105 = vector.shape_cast %104 : vector<1x8x8x128xbf16> to vector<8x8x128xbf16>
    %106 = vector.shape_cast %103 : vector<8x8x128xbf16> to vector<1x8x8x128xbf16>
    tpu.vector_store %arg11[%c0_113, %c0_114, %c0_115, %c0_116], %106 {strides = array<i32>} : memref<1x8x8x128xbf16, #tpu.memory_space<vmem>>, vector<1x8x8x128xbf16>,
    return
  }
  func.func @transform_0(%arg0: i32) -> (i32, i32, i32, i32, i32, i32) {
    %c0_i32 = arith.constant 0 : i32
    %c0_i32_0 = arith.constant 0 : i32
    %c0_i32_1 = arith.constant 0 : i32
    %c0_i32_2 = arith.constant 0 : i32
    %c0_i32_3 = arith.constant 0 : i32
    %c0_i32_4 = arith.constant 0 : i32
    return %c0_i32, %c0_i32_0, %arg0, %c0_i32_1, %c0_i32_2, %c0_i32_3 : i32, i32, i32, i32, i32, i32
  }
  func.func @transform_1(%arg0: i32) -> (i32, i32) {
    %c0_i32 = arith.constant 0 : i32
    %c0_i32_0 = arith.constant 0 : i32
    %c0_i32_1 = arith.constant 0 : i32
    return %c0_i32, %c0_i32_0 : i32, i32
  }
  func.func @transform_2(%arg0: i32) -> (i32, i32) {
    %c0_i32 = arith.constant 0 : i32
    %c0_i32_0 = arith.constant 0 : i32
    %c0_i32_1 = arith.constant 0 : i32
    return %c0_i32, %c0_i32_0 : i32, i32
  }
  func.func @transform_3(%arg0: i32) -> (i32, i32) {
    %c0_i32 = arith.constant 0 : i32
    %c0_i32_0 = arith.constant 0 : i32
    %c0_i32_1 = arith.constant 0 : i32
    return %c0_i32, %c0_i32_0 : i32, i32
  }
  func.func @transform_4(%arg0: i32) -> (i32, i32) {
    %c0_i32 = arith.constant 0 : i32
    %c0_i32_0 = arith.constant 0 : i32
    %c0_i32_1 = arith.constant 0 : i32
    return %c0_i32, %c0_i32_0 : i32, i32
  }
  func.func @transform_5(%arg0: i32) -> (i32, i32) {
    %c0_i32 = arith.constant 0 : i32
    %c0_i32_0 = arith.constant 0 : i32
    %c0_i32_1 = arith.constant 0 : i32
    return %c0_i32, %c0_i32_0 : i32, i32
  }
  func.func @transform_6(%arg0: i32) -> (i32, i32) {
    %c0_i32 = arith.constant 0 : i32
    %c0_i32_0 = arith.constant 0 : i32
    %c0_i32_1 = arith.constant 0 : i32
    return %c0_i32, %c0_i32_0 : i32, i32
  }
  func.func @transform_7(%arg0: i32) -> (i32, i32) {
    %c0_i32 = arith.constant 0 : i32
    %c0_i32_0 = arith.constant 0 : i32
    %c0_i32_1 = arith.constant 0 : i32
    return %c0_i32, %c0_i32_0 : i32, i32
  }
  func.func @transform_8(%arg0: i32) -> (i32, i32) {
    %c0_i32 = arith.constant 0 : i32
    %c0_i32_0 = arith.constant 0 : i32
    %c0_i32_1 = arith.constant 0 : i32
    return %c0_i32, %c0_i32_0 : i32, i32
  }
  func.func @transform_9(%arg0: i32) -> (i32, i32) {
    %c0_i32 = arith.constant 0 : i32
    %c0_i32_0 = arith.constant 0 : i32
    %c0_i32_1 = arith.constant 0 : i32
    return %c0_i32, %c0_i32_0 : i32, i32
  }
  func.func @transform_10(%arg0: i32) -> (i32, i32, i32, i32) {
    %c0_i32 = arith.constant 0 : i32
    %c0_i32_0 = arith.constant 0 : i32
    %c0_i32_1 = arith.constant 0 : i32
    %c0_i32_2 = arith.constant 0 : i32
    return %arg0, %c0_i32, %c0_i32_0, %c0_i32_1 : i32, i32, i32, i32
  }
}

</mosaic_0001>

<bundles_post_ra>
// kernel: resblock_forward.1
= control target key start
LH: loop header
LB: loop body
LE: loop exit
PB: predicated region body
PF: predicated region fallthrough
CT: control target
= control target key end

     0   :  { %s4025_s13 = smov 0   ;;  %s4027_s14 = smov 0   ;;  %s5038_s0 = inlined_call_operand.vmem [shape: f32[2,2,2,9,9,128], index: 0, kind: input, shape index: {}]   ;;  %s5039_s1 = inlined_call_operand.vmem [shape: bf16[1152,128], index: 1, kind: input, shape index: {}]   ;;  %s5040_s2 = inlined_call_operand.vmem [shape: f32[1,128], index: 2, kind: input, shape index: {}]   ;;  %s5041_s3 = inlined_call_operand.vmem [shape: f32[1,128], index: 3, kind: input, shape index: {}]   ;;  %s5042_s4 = inlined_call_operand.vmem [shape: bf16[1152,128], index: 4, kind: input, shape index: {}]   ;;  %s5043_s5 = inlined_call_operand.vmem [shape: f32[1,128], index: 5, kind: input, shape index: {}]   ;;  %s5044_s6 = inlined_call_operand.vmem [shape: f32[1,128], index: 6, kind: input, shape index: {}]   ;;  %s5045_s7 = inlined_call_operand.vmem [shape: bf16[128,128], index: 7, kind: input, shape index: {}]   ;;  %s5046_s8 = inlined_call_operand.vmem [shape: f32[1,128], index: 8, kind: input, shape index: {}]   ;;  %s5047_s9 = inlined_call_operand.vmem [shape: f32[1,128], index: 9, kind: input, shape index: {}]   ;;  %s5048_s10 = inlined_call_operand.vmem [shape: bf16[2,8,8,128], index: 10, kind: output, shape index: {}]  }
   0x1   :  { %s4029_s15 = smov 0  }
   0x2 LB: > { %s3065_s16 = sadd.s32 4294967295, %s3967_s15   ;;  %s4042_s17 = sadd.s32 1, %s3967_s15   ;;  %s3967_s15 = sphi %s4029_s15, %s5052_s15   ;;  %s3963_s14 = sphi %s4027_s14, %s5051_s14   ;;  %s3959_s13 = sphi %s4025_s13, %s5050_s13  }
   0x3   : > { %s24_s18 = ssub.s32 %s3967_s15, %s4042_s17  ;;  %s27_s19 = sadd.s32 1, %s3963_s14 }
   0x4   : > { %p25_p0 = scmp.eq.s32.totalorder %s24_s18, 0  ;;  %p34_p1 = scmp.ne.s32.totalorder %s3963_s14, %s3959_s13 }
   0x5   : > { %p35_p2 = scmp.eq.s32.totalorder %s3967_s15, 0  ;;  %p3068_p4 = scmp.ge.s32.totalorder %s3967_s15, 2 }
   0x6   : > { %s4051_s20 = scalar_select %p25_p0, %s3963_s14, %s27_s19  }
   0x7   : > { %p36_p3 = por %p35_p2, %p34_p1  ;;  %302 = sbr.rel (%p3068_p4) target bundleno = 55 (0x37), region = 52 }
   0xe   : > { %305 = sbr.rel (!%p36_p3) target bundleno = 55 (0x37), region = 56  ;;  %s307_s21 = sand.u32 (%p36_p3), 1, %s3963_s14  }
   0xf   : > { %s3766_s22 = smul.u32 (%p36_p3), 144, %s3967_s15 }
  0x10   : > { %s3765_s23 = smul.u32 (%p36_p3), 576, %s307_s21 }
  0x11   : > { %s4059_s26 = scalar_lea.vmem (%p36_p3), %s5038_s0, %s3766_s22 }
  0x12   : > { %v482_v0 = vld [vmem:[%s4059_s26] sm:$0xff] (%p36_p3)  ;;  %v484_v1 = vld [vmem:[%s4059_s26 + $0x8] sm:$0xff] (%p36_p3)  ;;  %v486_v2 = vld [vmem:[%s4059_s26 + $0x10] sm:$0xff] (%p36_p3)  ;;  %s4064_s27 = scalar_lea.vmem (%p36_p3), [#allocation3], %s3765_s23 }
  0x13   : > { %483 = vst [vmem:[%s4064_s27] sm:$0xff] (%p36_p3), %v482_v0  ;;  %485 = vst [vmem:[%s4064_s27 + $0x8] sm:$0xff] (%p36_p3), %v484_v1  ;;  %v488_v3 = vld [vmem:[%s4059_s26 + $0x18] sm:$0xff] (%p36_p3)  ;;  %v490_v4 = vld [vmem:[%s4059_s26 + $0x20] sm:$0xff] (%p36_p3) }
  0x14   : > { %487 = vst [vmem:[%s4064_s27 + $0x10] sm:$0xff] (%p36_p3), %v486_v2  ;;  %v492_v5 = vld [vmem:[%s4059_s26 + $0x28] sm:$0xff] (%p36_p3)  ;;  %489 = vst [vmem:[%s4064_s27 + $0x18] sm:$0xff] (%p36_p3), %v488_v3  ;;  %v494_v6 = vld [vmem:[%s4059_s26 + $0x30] sm:$0xff] (%p36_p3) }
  0x15   : > { %491 = vst [vmem:[%s4064_s27 + $0x20] sm:$0xff] %v490_v4  ;;  %493 = vst [vmem:[%s4064_s27 + $0x28] sm:$0xff] %v492_v5  ;;  %v496_v7 = vld [vmem:[%s4059_s26 + $0x38] sm:$0xff]  ;;  %v498_v8 = vld [vmem:[%s4059_s26 + $0x40] sm:$0xff] }
  0x16   : > { %495 = vst [vmem:[%s4064_s27 + $0x30] sm:$0xff] %v494_v6  ;;  %497 = vst [vmem:[%s4064_s27 + $0x38] sm:$0xff] %v496_v7  ;;  %v500_v9 = vld [vmem:[%s4059_s26 + $0x48] sm:$0xff]  ;;  %v502_v10 = vld [vmem:[%s4059_s26 + $0x50] sm:$0xff] }
  0x17   : > { %499 = vst [vmem:[%s4064_s27 + $0x40] sm:$0xff] %v498_v8  ;;  %v504_v11 = vld [vmem:[%s4059_s26 + $0x58] sm:$0xff]  ;;  %501 = vst [vmem:[%s4064_s27 + $0x48] sm:$0xff] %v500_v9  ;;  %v506_v12 = vld [vmem:[%s4059_s26 + $0x60] sm:$0xff] }
  0x18   : > { %503 = vst [vmem:[%s4064_s27 + $0x50] sm:$0xff] %v502_v10  ;;  %505 = vst [vmem:[%s4064_s27 + $0x58] sm:$0xff] %v504_v11  ;;  %v508_v13 = vld [vmem:[%s4059_s26 + $0x68] sm:$0xff]  ;;  %v510_v14 = vld [vmem:[%s4059_s26 + $0x70] sm:$0xff] }
  0x19   : > { %507 = vst [vmem:[%s4064_s27 + $0x60] sm:$0xff] %v506_v12  ;;  %509 = vst [vmem:[%s4064_s27 + $0x68] sm:$0xff] %v508_v13  ;;  %v512_v15 = vld [vmem:[%s4059_s26 + $0x78] sm:$0xff]  ;;  %v514_v16 = vld [vmem:[%s4059_s26 + $0x80] sm:$0xff] }
  0x1a   : > { %511 = vst [vmem:[%s4064_s27 + $0x70] sm:$0xff] %v510_v14  ;;  %v516_v17 = vld [vmem:[%s4059_s26 + $0x88] sm:$0xff]  ;;  %513 = vst [vmem:[%s4064_s27 + $0x78] sm:$0xff] %v512_v15  ;;  %v518_v18 = vld [vmem:[%s4059_s26 + $0x120] sm:$0xff] }
  0x1b   : > { %515 = vst [vmem:[%s4064_s27 + $0x80] sm:$0xff] %v514_v16  ;;  %517 = vst [vmem:[%s4064_s27 + $0x88] sm:$0xff] %v516_v17  ;;  %v520_v19 = vld [vmem:[%s4059_s26 + $0x128] sm:$0xff]  ;;  %v522_v20 = vld [vmem:[%s4059_s26 + $0x130] sm:$0xff] }
  0x1c   : > { %519 = vst [vmem:[%s4064_s27 + $0x90] sm:$0xff] %v518_v18  ;;  %521 = vst [vmem:[%s4064_s27 + $0x98] sm:$0xff] %v520_v19  ;;  %v524_v21 = vld [vmem:[%s4059_s26 + $0x138] sm:$0xff]  ;;  %v526_v22 = vld [vmem:[%s4059_s26 + $0x140] sm:$0xff] }
  0x1d   : > { %523 = vst [vmem:[%s4064_s27 + $0xa0] sm:$0xff] %v522_v20  ;;  %v528_v23 = vld [vmem:[%s4059_s26 + $0x148] sm:$0xff]  ;;  %525 = vst [vmem:[%s4064_s27 + $0xa8] sm:$0xff] %v524_v21  ;;  %v530_v24 = vld [vmem:[%s4059_s26 + $0x150] sm:$0xff] }
  0x1e   : > { %527 = vst [vmem:[%s4064_s27 + $0xb0] sm:$0xff] %v526_v22  ;;  %529 = vst [vmem:[%s4064_s27 + $0xb8] sm:$0xff] %v528_v23  ;;  %v532_v25 = vld [vmem:[%s4059_s26 + $0x158] sm:$0xff]  ;;  %v534_v26 = vld [vmem:[%s4059_s26 + $0x160] sm:$0xff] }
  0x1f   : > { %531 = vst [vmem:[%s4064_s27 + $0xc0] sm:$0xff] %v530_v24  ;;  %533 = vst [vmem:[%s4064_s27 + $0xc8] sm:$0xff] %v532_v25  ;;  %v536_v27 = vld [vmem:[%s4059_s26 + $0x168] sm:$0xff]  ;;  %v538_v28 = vld [vmem:[%s4059_s26 + $0x170] sm:$0xff] }
  0x20   : > { %535 = vst [vmem:[%s4064_s27 + $0xd0] sm:$0xff] %v534_v26  ;;  %v540_v29 = vld [vmem:[%s4059_s26 + $0x178] sm:$0xff]  ;;  %537 = vst [vmem:[%s4064_s27 + $0xd8] sm:$0xff] %v536_v27  ;;  %v542_v30 = vld [vmem:[%s4059_s26 + $0x180] sm:$0xff] }
  0x21   : > { %539 = vst [vmem:[%s4064_s27 + $0xe0] sm:$0xff] %v538_v28  ;;  %541 = vst [vmem:[%s4064_s27 + $0xe8] sm:$0xff] %v540_v29  ;;  %v544_v31 = vld [vmem:[%s4059_s26 + $0x188] sm:$0xff]  ;;  %v546_v32 = vld [vmem:[%s4059_s26 + $0x190] sm:$0xff] }
  0x22   : > { %543 = vst [vmem:[%s4064_s27 + $0xf0] sm:$0xff] %v542_v30  ;;  %545 = vst [vmem:[%s4064_s27 + $0xf8] sm:$0xff] %v544_v31  ;;  %v548_v33 = vld [vmem:[%s4059_s26 + $0x198] sm:$0xff]  ;;  %v550_v34 = vld [vmem:[%s4059_s26 + $0x1a0] sm:$0xff] }
  0x23   : > { %547 = vst [vmem:[%s4064_s27 + $0x100] sm:$0xff] %v546_v32  ;;  %v552_v35 = vld [vmem:[%s4059_s26 + $0x1a8] sm:$0xff]  ;;  %549 = vst [vmem:[%s4064_s27 + $0x108] sm:$0xff] %v548_v33  ;;  %v554_v36 = vld [vmem:[%s4059_s26 + $0x240] sm:$0xff] }
  0x24   : > { %551 = vst [vmem:[%s4064_s27 + $0x110] sm:$0xff] %v550_v34  ;;  %553 = vst [vmem:[%s4064_s27 + $0x118] sm:$0xff] %v552_v35  ;;  %v556_v37 = vld [vmem:[%s4059_s26 + $0x248] sm:$0xff]  ;;  %v558_v38 = vld [vmem:[%s4059_s26 + $0x250] sm:$0xff] }
  0x25   : > { %555 = vst [vmem:[%s4064_s27 + $0x120] sm:$0xff] %v554_v36  ;;  %557 = vst [vmem:[%s4064_s27 + $0x128] sm:$0xff] %v556_v37  ;;  %v560_v39 = vld [vmem:[%s4059_s26 + $0x258] sm:$0xff]  ;;  %v562_v40 = vld [vmem:[%s4059_s26 + $0x260] sm:$0xff] }
  0x26   : > { %559 = vst [vmem:[%s4064_s27 + $0x130] sm:$0xff] %v558_v38  ;;  %v564_v41 = vld [vmem:[%s4059_s26 + $0x268] sm:$0xff]  ;;  %561 = vst [vmem:[%s4064_s27 + $0x138] sm:$0xff] %v560_v39  ;;  %v566_v42 = vld [vmem:[%s4059_s26 + $0x270] sm:$0xff] }
  0x27   : > { %563 = vst [vmem:[%s4064_s27 + $0x140] sm:$0xff] %v562_v40  ;;  %565 = vst [vmem:[%s4064_s27 + $0x148] sm:$0xff] %v564_v41  ;;  %v568_v43 = vld [vmem:[%s4059_s26 + $0x278] sm:$0xff]  ;;  %v570_v44 = vld [vmem:[%s4059_s26 + $0x280] sm:$0xff] }
  0x28   : > { %567 = vst [vmem:[%s4064_s27 + $0x150] sm:$0xff] %v566_v42  ;;  %569 = vst [vmem:[%s4064_s27 + $0x158] sm:$0xff] %v568_v43  ;;  %v572_v45 = vld [vmem:[%s4059_s26 + $0x288] sm:$0xff]  ;;  %v574_v46 = vld [vmem:[%s4059_s26 + $0x290] sm:$0xff] }
  0x29   : > { %571 = vst [vmem:[%s4064_s27 + $0x160] sm:$0xff] %v570_v44  ;;  %v576_v47 = vld [vmem:[%s4059_s26 + $0x298] sm:$0xff]  ;;  %573 = vst [vmem:[%s4064_s27 + $0x168] sm:$0xff] %v572_v45  ;;  %v578_v48 = vld [vmem:[%s4059_s26 + $0x2a0] sm:$0xff] }
  0x2a   : > { %575 = vst [vmem:[%s4064_s27 + $0x170] sm:$0xff] %v574_v46  ;;  %577 = vst [vmem:[%s4064_s27 + $0x178] sm:$0xff] %v576_v47  ;;  %v580_v49 = vld [vmem:[%s4059_s26 + $0x2a8] sm:$0xff]  ;;  %v582_v50 = vld [vmem:[%s4059_s26 + $0x2b0] sm:$0xff] }
  0x2b   : > { %579 = vst [vmem:[%s4064_s27 + $0x180] sm:$0xff] %v578_v48  ;;  %581 = vst [vmem:[%s4064_s27 + $0x188] sm:$0xff] %v580_v49  ;;  %v584_v51 = vld [vmem:[%s4059_s26 + $0x2b8] sm:$0xff]  ;;  %v586_v52 = vld [vmem:[%s4059_s26 + $0x2c0] sm:$0xff] }
  0x2c   : > { %583 = vst [vmem:[%s4064_s27 + $0x190] sm:$0xff] %v582_v50  ;;  %v588_v53 = vld [vmem:[%s4059_s26 + $0x2c8] sm:$0xff]  ;;  %585 = vst [vmem:[%s4064_s27 + $0x198] sm:$0xff] %v584_v51  ;;  %v590_v54 = vld [vmem:[%s4059_s26 + $0x360] sm:$0xff] }
  0x2d   : > { %587 = vst [vmem:[%s4064_s27 + $0x1a0] sm:$0xff] %v586_v52  ;;  %589 = vst [vmem:[%s4064_s27 + $0x1a8] sm:$0xff] %v588_v53  ;;  %v592_v55 = vld [vmem:[%s4059_s26 + $0x368] sm:$0xff]  ;;  %v594_v56 = vld [vmem:[%s4059_s26 + $0x370] sm:$0xff] }
  0x2e   : > { %591 = vst [vmem:[%s4064_s27 + $0x1b0] sm:$0xff] %v590_v54  ;;  %593 = vst [vmem:[%s4064_s27 + $0x1b8] sm:$0xff] %v592_v55  ;;  %v596_v57 = vld [vmem:[%s4059_s26 + $0x378] sm:$0xff]  ;;  %v598_v58 = vld [vmem:[%s4059_s26 + $0x380] sm:$0xff] }
  0x2f   : > { %595 = vst [vmem:[%s4064_s27 + $0x1c0] sm:$0xff] %v594_v56  ;;  %v600_v59 = vld [vmem:[%s4059_s26 + $0x388] sm:$0xff]  ;;  %597 = vst [vmem:[%s4064_s27 + $0x1c8] sm:$0xff] %v596_v57  ;;  %v602_v60 = vld [vmem:[%s4059_s26 + $0x390] sm:$0xff] }
  0x30   : > { %599 = vst [vmem:[%s4064_s27 + $0x1d0] sm:$0xff] %v598_v58  ;;  %601 = vst [vmem:[%s4064_s27 + $0x1d8] sm:$0xff] %v600_v59  ;;  %v604_v61 = vld [vmem:[%s4059_s26 + $0x398] sm:$0xff]  ;;  %v606_v62 = vld [vmem:[%s4059_s26 + $0x3a0] sm:$0xff] }
  0x31   : > { %603 = vst [vmem:[%s4064_s27 + $0x1e0] sm:$0xff] %v602_v60  ;;  %605 = vst [vmem:[%s4064_s27 + $0x1e8] sm:$0xff] %v604_v61  ;;  %v608_v63 = vld [vmem:[%s4059_s26 + $0x3a8] sm:$0xff]  ;;  %v610_v0 = vld [vmem:[%s4059_s26 + $0x3b0] sm:$0xff] }
  0x32   : > { %607 = vst [vmem:[%s4064_s27 + $0x1f0] sm:$0xff] %v606_v62  ;;  %v612_v1 = vld [vmem:[%s4059_s26 + $0x3b8] sm:$0xff]  ;;  %609 = vst [vmem:[%s4064_s27 + $0x1f8] sm:$0xff] %v608_v63  ;;  %v614_v2 = vld [vmem:[%s4059_s26 + $0x3c0] sm:$0xff] }
  0x33   : > { %611 = vst [vmem:[%s4064_s27 + $0x200] sm:$0xff] %v610_v0  ;;  %613 = vst [vmem:[%s4064_s27 + $0x208] sm:$0xff] %v612_v1  ;;  %v616_v3 = vld [vmem:[%s4059_s26 + $0x3c8] sm:$0xff]  ;;  %v618_v4 = vld [vmem:[%s4059_s26 + $0x3d0] sm:$0xff] }
  0x34   : > { %615 = vst [vmem:[%s4064_s27 + $0x210] sm:$0xff] %v614_v2  ;;  %617 = vst [vmem:[%s4064_s27 + $0x218] sm:$0xff] %v616_v3  ;;  %v620_v5 = vld [vmem:[%s4059_s26 + $0x3d8] sm:$0xff]  ;;  %v622_v6 = vld [vmem:[%s4059_s26 + $0x3e0] sm:$0xff] }
  0x35   : > { %619 = vst [vmem:[%s4064_s27 + $0x220] sm:$0xff] %v618_v4  ;;  %v624_v7 = vld [vmem:[%s4059_s26 + $0x3e8] sm:$0xff]  ;;  %621 = vst [vmem:[%s4064_s27 + $0x228] sm:$0xff] %v620_v5 }
  0x36   : > { %623 = vst [vmem:[%s4064_s27 + $0x230] sm:$0xff] %v622_v6  ;;  %625 = vst [vmem:[%s4064_s27 + $0x238] sm:$0xff] %v624_v7 }
  0x37 PF: > { %p3070_p5 = scmp.ge.s32.totalorder %s3967_s15, 1  ;;  %p630_p6 = scmp.lt.s32.totalorder %s3967_s15, 3 }
  0x39   : > { %p631_p7 = pnand %p3070_p5, %p630_p6 }
  0x3a   : > { %v3793_v8 = vld [vmem:[%s5039_s1 + $0x40] sm:$0xff] (!%p631_p7)   ;;  %v3797_v12 = vld [vmem:[%s5039_s1 + $0x48] sm:$0xff] (!%p631_p7)   ;;  %v3801_v16 = vld [vmem:[%s5039_s1 + $0x50] sm:$0xff] (!%p631_p7)   ;;  %s637_s12 = sand.u32 (!%p631_p7), 1, %s3959_s13   ;;  %p4983_p8 = scmp.lt.s32.totalorder (!%p631_p7), %s3065_s16, 1 }
  0x3b   : > { %634 = sbr.rel (%p631_p7) target bundleno = 707 (0x2c3), region = 94  ;;  %v3794_v9 = vld [vmem:[%s5039_s1 + $0xc0] sm:$0xff] (!%p631_p7)   ;;  %3321 = vmatprep.subr.bf16.mxu0 (!%p631_p7), %v3793_v8  ;;  %v3798_v13 = vld [vmem:[%s5039_s1 + $0xc8] sm:$0xff] (!%p631_p7)   ;;  %v3802_v17 = vld [vmem:[%s5039_s1 + $0xd0] sm:$0xff] (!%p631_p7)  }
  0x3c   : > { %v3795_v10 = vld [vmem:[%s5039_s1] sm:$0xff] (!%p631_p7)   ;;  %3361 = vmatprep.subr.bf16.mxu1 (!%p631_p7), %v3794_v9  ;;  %v3799_v14 = vld [vmem:[%s5039_s1 + $0x8] sm:$0xff] (!%p631_p7)   ;;  %v3803_v18 = vld [vmem:[%s5039_s1 + $0x10] sm:$0xff] (!%p631_p7)   ;;  %s3767_s25 = smul.u32 (!%p631_p7), 576, %s637_s12 }
  0x3d   : > { %v3796_v11 = vld [vmem:[%s5039_s1 + $0x80] sm:$0xff] (!%p631_p7)   ;;  %3322 = vmatpush3.bf16.msra.mxu0 (!%p631_p7), %v3795_v10  ;;  %v3800_v15 = vld [vmem:[%s5039_s1 + $0x88] sm:$0xff] (!%p631_p7)   ;;  %v3804_v19 = vld [vmem:[%s5039_s1 + $0x90] sm:$0xff] (!%p631_p7)  }
  0x3e   : > { %3362 = vmatpush3.bf16.msra.mxu1 (!%p631_p7), %v3796_v11  ;;  %3323 = vmatprep.subr.bf16.mxu0 (!%p631_p7), %v3797_v12  ;;  %v3805_v20 = vld [vmem:[%s5039_s1 + $0x58] sm:$0xff] (!%p631_p7)   ;;  %v3809_v24 = vld [vmem:[%s5039_s1 + $0x60] sm:$0xff] (!%p631_p7)   ;;  %v3813_v28 = vld [vmem:[%s5039_s1 + $0x68] sm:$0xff] (!%p631_p7)   ;;  %s4306_s23 = scalar_lea.vmem (!%p631_p7), [#allocation3], %s3767_s25 }
  0x3f   : > { %3363 = vmatprep.subr.bf16.mxu1 (!%p631_p7), %v3798_v13  ;;  %v3806_v21 = vld [vmem:[%s5039_s1 + $0xd8] sm:$0xff] (!%p631_p7)   ;;  %v3810_v25 = vld [vmem:[%s5039_s1 + $0xe0] sm:$0xff] (!%p631_p7)   ;;  %v3814_v29 = vld [vmem:[%s5039_s1 + $0xe8] sm:$0xff] (!%p631_p7)  }
  0x40   : > { %v3807_v22 = vld [vmem:[%s5039_s1 + $0x18] sm:$0xff] (!%p631_p7)   ;;  %v3811_v26 = vld [vmem:[%s5039_s1 + $0x20] sm:$0xff] (!%p631_p7)   ;;  %v3815_v30 = vld [vmem:[%s5039_s1 + $0x28] sm:$0xff] (!%p631_p7)  }
  0x41   : > { %3324 = vmatpush3.bf16.msra.mxu0 (!%p631_p7), %v3799_v14  ;;  %v3808_v23 = vld [vmem:[%s5039_s1 + $0x98] sm:$0xff] (!%p631_p7)   ;;  %v3812_v27 = vld [vmem:[%s5039_s1 + $0xa0] sm:$0xff] (!%p631_p7)   ;;  %v3816_v31 = vld [vmem:[%s5039_s1 + $0xa8] sm:$0xff] (!%p631_p7)  }
  0x42   : > { %3364 = vmatpush3.bf16.msra.mxu1 %v3800_v15  ;;  %3325 = vmatprep.subr.bf16.mxu0 %v3801_v16  ;;  %v3817_v32 = vld [vmem:[%s5039_s1 + $0x70] sm:$0xff]   ;;  %v3821_v36 = vld [vmem:[%s5039_s1 + $0x78] sm:$0xff]   ;;  %v4310_v41 = vld [vmem:[%s4306_s23 + $0xa0] sm:$0xff]  ;;  %s5054_s16 = smov (!%p4983_p8, %s3065_s16), 1 }
  0x43   : > { %3365 = vmatprep.subr.bf16.mxu1 %v3802_v17  ;;  %v3818_v33 = vld [vmem:[%s5039_s1 + $0xf0] sm:$0xff]   ;;  %v3822_v37 = vld [vmem:[%s5039_s1 + $0xf8] sm:$0xff]   ;;  %v3081_v42 = vld [vmem:[%s4306_s23 + $0x120] sm:$0xff]  ;;  %s3297_s15 = sshll.u32 %s5054_s16, 5 }
  0x44   : > { %v3819_v34 = vld [vmem:[%s5039_s1 + $0x30] sm:$0xff]   ;;  %v3823_v38 = vld [vmem:[%s5039_s1 + $0x38] sm:$0xff]   ;;  %v680_v45 = vld [vmem:[%s4306_s23] sm:$0xff]  ;;  %s5013_s26 = scalar_lea.vmem %s5048_s10, %s3297_s15 }
  0x45   : > { %3326 = vmatpush3.bf16.msra.mxu0 %v3803_v18  ;;  %v3820_v35 = vld [vmem:[%s5039_s1 + $0xb0] sm:$0xff]   ;;  %v3824_v39 = vld [vmem:[%s5039_s1 + $0xb8] sm:$0xff]   ;;  %v705_v49 = vld [vmem:[%s4306_s23 + $0x1] sm:$0xff] }
  0x46   : > { %3366 = vmatpush3.bf16.msra.mxu1 %v3804_v19  ;;  %3327 = vmatprep.subr.bf16.mxu0 %v3805_v20  ;;  %v3073_v40 = vld [vmem:[%s4306_s23 + $0x90] sm:$0xff]  ;;  %v3825_v52 = vld [vmem:[%s5039_s1 + $0x140] sm:$0xff]   ;;  %v3829_v56 = vld [vmem:[%s5039_s1 + $0x148] sm:$0xff]  }
  0x47   : > { %3367 = vmatprep.subr.bf16.mxu1 %v3806_v21  ;;  %v701_v43 = vpack.c.bf16 %v4310_v41, %v3073_v40  ;;  %v3082_v44 = vld [vmem:[%s4306_s23 + $0x130] sm:$0xff]  ;;  %v3826_v53 = vld [vmem:[%s5039_s1 + $0x100] sm:$0xff]   ;;  %v3830_v57 = vld [vmem:[%s5039_s1 + $0x108] sm:$0xff]  }
  0x48   : > { %v4317_v46 = vld [vmem:[%s4306_s23 + $0x10] sm:$0xff]  ;;  %v726_v47 = vpack.c.bf16 %v3082_v44, %v3081_v42  ;;  %v3827_v54 = vld [vmem:[%s5039_s1 + $0x1c0] sm:$0xff]   ;;  %v3831_v58 = vld [vmem:[%s5039_s1 + $0x1c8] sm:$0xff]  }
  0x49   : > { %3328 = vmatpush3.bf16.msra.mxu0 %v3807_v22  ;;  %v688_v48 = vpack.c.bf16 %v4317_v46, %v680_v45  ;;  %v4322_v50 = vld [vmem:[%s4306_s23 + $0x11] sm:$0xff]  ;;  %1401 = vmatprep.mubr.bf16.mxu0 %v701_v43  ;;  %v3828_v55 = vld [vmem:[%s5039_s1 + $0x180] sm:$0xff]   ;;  %v3832_v1 = vld [vmem:[%s5039_s1 + $0x188] sm:$0xff]  }
  0x4a   : > { %3368 = vmatpush3.bf16.msra.mxu1 %v3808_v23  ;;  %3329 = vmatprep.subr.bf16.mxu0 %v3809_v24  ;;  %v713_v51 = vpack.c.bf16 %v4322_v50, %v705_v49  ;;  %v4347_v59 = vld [vmem:[%s4306_s23 + $0xb0] sm:$0xff]  ;;  %v4350_v60 = vld [vmem:[%s4306_s23 + $0xc0] sm:$0xff]  ;;  %v3837_v12 = vld [vmem:[%s5039_s1 + $0x158] sm:$0xff]  }
  0x4b   : > { %3369 = vmatprep.subr.bf16.mxu1 %v3810_v25  ;;  %1466 = vmatprep.mubr.bf16.mxu1 %v726_v47  ;;  %v3083_v61 = vld [vmem:[%s4306_s23 + $0x140] sm:$0xff]  ;;  %v3084_v62 = vld [vmem:[%s4306_s23 + $0x150] sm:$0xff]  ;;  %v702_v63 = vpack.c.bf16 %v4350_v60, %v4347_v59  ;;  %v3838_v13 = vld [vmem:[%s5039_s1 + $0x118] sm:$0xff]   ;;  %v777_v49 = vpack.c.bf16 %v4347_v59, %v4310_v41 }
  0x4c   : > { %v727_v0 = vpack.c.bf16 %v3084_v62, %v3083_v61  ;;  %v4360_v2 = vld [vmem:[%s4306_s23 + $0x20] sm:$0xff]  ;;  %v4363_v3 = vld [vmem:[%s4306_s23 + $0x30] sm:$0xff]  ;;  %v3839_v14 = vld [vmem:[%s5039_s1 + $0x1d8] sm:$0xff]  }
  0x4d   : > { %3330 = vmatpush3.bf16.msra.mxu0 %v3811_v26  ;;  %v4366_v4 = vld [vmem:[%s4306_s23 + $0x21] sm:$0xff]  ;;  %v689_v5 = vpack.c.bf16 %v4363_v3, %v4360_v2  ;;  %v4371_v6 = vld [vmem:[%s4306_s23 + $0x31] sm:$0xff] }
  0x4e   : > { %3370 = vmatpush3.bf16.msra.mxu1 %v3812_v27  ;;  %3331 = vmatprep.subr.bf16.mxu0 %v3813_v28  ;;  %v714_v7 = vpack.c.bf16 %v4371_v6, %v4366_v4  ;;  %v3833_v8 = vld [vmem:[%s5039_s1 + $0x150] sm:$0xff]   ;;  %v4400_v16 = vld [vmem:[%s4306_s23 + $0xe0] sm:$0xff]  ;;  %v3840_v21 = vld [vmem:[%s5039_s1 + $0x198] sm:$0xff]  }
  0x4f   : > { %3371 = vmatprep.subr.bf16.mxu1 %v3814_v29  ;;  %v3834_v9 = vld [vmem:[%s5039_s1 + $0x110] sm:$0xff]   ;;  %v3085_v18 = vld [vmem:[%s4306_s23 + $0x160] sm:$0xff]  ;;  %v3848_v42 = vld [vmem:[%s5039_s1 + $0x1a8] sm:$0xff]  }
  0x50   : > { %v3835_v10 = vld [vmem:[%s5039_s1 + $0x1d0] sm:$0xff]   ;;  %v4410_v22 = vld [vmem:[%s4306_s23 + $0x40] sm:$0xff]  ;;  %v3856_v62 = vld [vmem:[%s5039_s1 + $0x1b8] sm:$0xff]  }
  0x51   : > { %3332 = vmatpush3.bf16.msra.mxu0 %v3815_v30  ;;  %v3836_v11 = vld [vmem:[%s5039_s1 + $0x190] sm:$0xff]   ;;  %v4416_v24 = vld [vmem:[%s4306_s23 + $0x41] sm:$0xff] }
  0x52   : > { %3372 = vmatpush3.bf16.msra.mxu1 %v3816_v31  ;;  %3333 = vmatprep.subr.bf16.mxu0 %v3817_v32  ;;  %v4397_v15 = vld [vmem:[%s4306_s23 + $0xd0] sm:$0xff]  ;;  %v3841_v28 = vld [vmem:[%s5039_s1 + $0x160] sm:$0xff]   ;;  %v3845_v32 = vld [vmem:[%s5039_s1 + $0x168] sm:$0xff]  }
  0x53   : > { %3373 = vmatprep.subr.bf16.mxu1 %v3818_v33  ;;  %v703_v17 = vpack.c.bf16 %v4400_v16, %v4397_v15  ;;  %v3086_v19 = vld [vmem:[%s4306_s23 + $0x170] sm:$0xff]  ;;  %v3842_v29 = vld [vmem:[%s5039_s1 + $0x120] sm:$0xff]   ;;  %v3846_v33 = vld [vmem:[%s5039_s1 + $0x128] sm:$0xff]  }
  0x54   : > { %v728_v20 = vpack.c.bf16 %v3086_v19, %v3085_v18  ;;  %v4413_v23 = vld [vmem:[%s4306_s23 + $0x50] sm:$0xff]  ;;  %v3843_v30 = vld [vmem:[%s5039_s1 + $0x1e0] sm:$0xff]   ;;  %v765_v18 = vpack.c.bf16 %v4410_v22, %v4363_v3  ;;  %v3860_v19 = vld [vmem:[%s5039_s1 + $0x218] sm:$0xff]  }
  0x55   : > { %3334 = vmatpush3.bf16.msra.mxu0 %v3819_v34  ;;  %v4419_v25 = vld [vmem:[%s4306_s23 + $0x51] sm:$0xff]  ;;  %v690_v26 = vpack.c.bf16 %v4413_v23, %v4410_v22  ;;  %v3844_v31 = vld [vmem:[%s5039_s1 + $0x1a0] sm:$0xff]   ;;  %v3847_v34 = vld [vmem:[%s5039_s1 + $0x1e8] sm:$0xff]  }
  0x56   : > { %3374 = vmatpush3.bf16.msra.mxu1 %v3820_v35  ;;  %3335 = vmatprep.subr.bf16.mxu0 %v3821_v36  ;;  %v715_v27 = vpack.c.bf16 %v4419_v25, %v4416_v24  ;;  %v4447_v35 = vld [vmem:[%s4306_s23 + $0xf0] sm:$0xff]  ;;  %v4450_v36 = vld [vmem:[%s4306_s23 + $0x100] sm:$0xff] }
  0x57   : > { %3375 = vmatprep.subr.bf16.mxu1 %v3822_v37  ;;  %v3087_v37 = vld [vmem:[%s4306_s23 + $0x180] sm:$0xff]  ;;  %v4463_v44 = vld [vmem:[%s4306_s23 + $0x70] sm:$0xff] }
  0x58   : > { %v4460_v43 = vld [vmem:[%s4306_s23 + $0x60] sm:$0xff]  ;;  %v3851_v41 = vld [vmem:[%s5039_s1 + $0x1f0] sm:$0xff]  }
  0x59   : > { %3336 = vmatpush3.bf16.msra.mxu0 %v3823_v38  ;;  %v704_v38 = vpack.c.bf16 %v4450_v36, %v4447_v35  ;;  %v691_v45 = vpack.c.bf16 %v4463_v44, %v4460_v43  ;;  %v4468_v47 = vld [vmem:[%s4306_s23 + $0x61] sm:$0xff]  ;;  %v3098_v59 = vld [vmem:[%s4306_s23 + $0x131] sm:$0xff] }
  0x5a   : > { %3376 = vmatpush3.bf16.msra.mxu1 %v3824_v39  ;;  %3401 = vmatprep.subr.bf16.mxu0 %v3825_v52  ;;  %v3088_v39 = vld [vmem:[%s4306_s23 + $0x190] sm:$0xff] }
  0x5b   : > { %3441 = vmatprep.subr.bf16.mxu1 %v3827_v54  ;;  %v729_v40 = vpack.c.bf16 %v3088_v39, %v3087_v37  ;;  %v3849_v52 = vld [vmem:[%s5039_s1 + $0x170] sm:$0xff]   ;;  %v3112_v37 = vld [vmem:[%s4306_s23 + $0x80] sm:$0xff] }
  0x5c   : > { %1402 = vmatmul.mubr.bf16.vlgmr.msra.gmra.mrb[0].mxu0 %v688_v48  ;;  %v4471_v48 = vld [vmem:[%s4306_s23 + $0x71] sm:$0xff]  ;;  %v767_v39 = vpack.c.bf16 %v3112_v37, %v4463_v44  ;;  %v3866_v44 = vld [vmem:[%s5042_s4] sm:$0xff]  }
  0x5d   : > { %1467 = vmatmul.mubr.bf16.vlgmr.msra.gmra.mrb[0].mxu1 %v713_v51  ;;  %3402 = vmatpush3.bf16.msra.mxu0 %v3826_v53  ;;  %v716_v51 = vpack.c.bf16 %v4471_v48, %v4468_v47  ;;  %v3850_v53 = vld [vmem:[%s5039_s1 + $0x130] sm:$0xff]  }
  0x5e   : > { %3442 = vmatpush3.bf16.msra.mxu1 %v3828_v55  ;;  %3403 = vmatprep.subr.bf16.mxu0 %v3829_v56  ;;  %v3852_v54 = vld [vmem:[%s5039_s1 + $0x1b0] sm:$0xff]   ;;  %v3853_v55 = vld [vmem:[%s5039_s1 + $0x178] sm:$0xff]  }
  0x5f   : > { %3443 = vmatprep.subr.bf16.mxu1 %v3831_v58  ;;  %1409 = vmatprep.mubr.bf16.mxu0 %v702_v63  ;;  %v3854_v56 = vld [vmem:[%s5039_s1 + $0x138] sm:$0xff]   ;;  %v3097_v58 = vld [vmem:[%s4306_s23 + $0x121] sm:$0xff]  ;;  %v3089_v63 = vld [vmem:[%s4306_s23 + $0x1b0] sm:$0xff] }
  0x60   : > { %1474 = vmatprep.mubr.bf16.mxu1 %v727_v0  ;;  %v751_v61 = vpack.c.bf16 %v3098_v59, %v3097_v58  ;;  %v3090_v0 = vld [vmem:[%s4306_s23 + $0x1c0] sm:$0xff]  ;;  %v3104_v3 = vld [vmem:[%s4306_s23 + $0x191] sm:$0xff] }
  0x61   : > { %3404 = vmatpush3.bf16.msra.mxu0 %v3830_v57  ;;  %v3855_v57 = vld [vmem:[%s5039_s1 + $0x1f8] sm:$0xff]   ;;  %v3120_v22 = vld [vmem:[%s4306_s23 + $0x110] sm:$0xff]  ;;  %v3882_v59 = vld [vmem:[%s5042_s4 + $0x20] sm:$0xff]  }
  0x62   : > { %3444 = vmatpush3.bf16.msra.mxu1 %v3832_v1  ;;  %3405 = vmatprep.subr.bf16.mxu0 %v3833_v8  ;;  %v739_v1 = vpack.c.bf16 %v3090_v0, %v3089_v63  ;;  %v3858_v8 = vld [vmem:[%s5039_s1 + $0x208] sm:$0xff]   ;;  %v3881_v58 = vld [vmem:[%s5042_s4 + $0x98] sm:$0xff]   ;;  %v3885_v63 = vld [vmem:[%s5042_s4 + $0xa0] sm:$0xff]  }
  0x63   : > { %3445 = vmatprep.subr.bf16.mxu1 %v3835_v10  ;;  %v3099_v10 = vld [vmem:[%s4306_s23 + $0x141] sm:$0xff] }
  0x64   : > { %1410 = vmatmul.mubr.bf16.gmra.mrb[4].mxu0 %v689_v5  ;;  %v3857_v5 = vld [vmem:[%s5039_s1 + $0x200] sm:$0xff]   ;;  %v3886_v0 = vld [vmem:[%s5042_s4 + $0x28] sm:$0xff]  }
  0x65   : > { %1475 = vmatmul.mubr.bf16.gmra.mrb[4].mxu1 %v714_v7  ;;  %3406 = vmatpush3.bf16.msra.mxu0 %v3834_v9  ;;  %v764_v7 = vpack.c.bf16 %v4360_v2, %v4317_v46  ;;  %v778_v9 = vpack.c.bf16 %v4397_v15, %v4350_v60  ;;  %v3092_v46 = vld [vmem:[%s4306_s23 + $0x1e0] sm:$0xff]  ;;  %v3859_v2 = vld [vmem:[%s5039_s1 + $0x210] sm:$0xff]  }
  0x66   : > { %3446 = vmatpush3.bf16.msra.mxu1 %v3836_v11  ;;  %3407 = vmatprep.subr.bf16.mxu0 %v3837_v12  ;;  %v3100_v11 = vld [vmem:[%s4306_s23 + $0x151] sm:$0xff]  ;;  %v3101_v60 = vld [vmem:[%s4306_s23 + $0x161] sm:$0xff] }
  0x67   : > { %3447 = vmatprep.subr.bf16.mxu1 %v3839_v14  ;;  %1417 = vmatprep.mubr.bf16.mxu0 %v703_v17  ;;  %v3091_v12 = vld [vmem:[%s4306_s23 + $0x1d0] sm:$0xff] }
  0x68   : > { %1482 = vmatprep.mubr.bf16.mxu1 %v728_v20  ;;  %v3102_v14 = vld [vmem:[%s4306_s23 + $0x171] sm:$0xff]  ;;  %v740_v15 = vpack.c.bf16 %v3092_v46, %v3091_v12  ;;  %v3897_v46 = vld [vmem:[%s5042_s4 + $0x140] sm:$0xff]  }
  0x69   : > { %3408 = vmatpush3.bf16.msra.mxu0 %v3838_v13  ;;  %v752_v13 = vpack.c.bf16 %v3100_v11, %v3099_v10  ;;  %v753_v17 = vpack.c.bf16 %v3102_v14, %v3101_v60  ;;  %v3093_v20 = vld [vmem:[%s4306_s23 + $0x1f0] sm:$0xff]  ;;  %v3892_v10 = vld [vmem:[%s5042_s4 + $0x78] sm:$0xff]   ;;  %v3899_v60 = vld [vmem:[%s5042_s4 + $0x1c0] sm:$0xff]  }
  0x6a   : > { %3448 = vmatpush3.bf16.msra.mxu1 %v3840_v21  ;;  %3409 = vmatprep.subr.bf16.mxu0 %v3841_v28  ;;  %v779_v21 = vpack.c.bf16 %v4447_v35, %v4400_v16  ;;  %v3103_v28 = vld [vmem:[%s4306_s23 + $0x181] sm:$0xff]  ;;  %v3863_v35 = vld [vmem:[%s5039_s1 + $0x230] sm:$0xff]   ;;  %v3894_v12 = vld [vmem:[%s5042_s4 + $0x38] sm:$0xff]  }
  0x6b   : > { %3449 = vmatprep.subr.bf16.mxu1 %v3843_v30  ;;  %v3862_v16 = vld [vmem:[%s5039_s1 + $0x228] sm:$0xff]   ;;  %v754_v30 = vpack.c.bf16 %v3104_v3, %v3103_v28  ;;  %v3893_v11 = vld [vmem:[%s5042_s4 + $0xb0] sm:$0xff]  }
  0x6c   : > { %1418 = vmatmul.mubr.bf16.gmra.mrb[8].mxu0 %v690_v26  ;;  %v3094_v26 = vld [vmem:[%s4306_s23 + $0x200] sm:$0xff] }
  0x6d   : > { %1483 = vmatmul.mubr.bf16.gmra.mrb[8].mxu1 %v715_v27  ;;  %3410 = vmatpush3.bf16.msra.mxu0 %v3842_v29  ;;  %v3861_v27 = vld [vmem:[%s5039_s1 + $0x220] sm:$0xff]   ;;  %v741_v29 = vpack.c.bf16 %v3094_v26, %v3093_v20 }
  0x6e   : > { %3450 = vmatpush3.bf16.msra.mxu1 %v3844_v31  ;;  %3411 = vmatprep.subr.bf16.mxu0 %v3845_v32  ;;  %v766_v31 = vpack.c.bf16 %v4460_v43, %v4413_v23  ;;  %v3095_v32 = vld [vmem:[%s4306_s23 + $0x210] sm:$0xff]  ;;  %v3864_v23 = vld [vmem:[%s5039_s1 + $0x238] sm:$0xff]   ;;  %v3128_v43 = vld [vmem:[%s4306_s23 + $0x81] sm:$0xff] }
  0x6f   : > { %3451 = vmatprep.subr.bf16.mxu1 %v3847_v34  ;;  %1425 = vmatprep.mubr.bf16.mxu0 %v704_v38  ;;  %v780_v34 = vpack.c.bf16 %v3120_v22, %v4450_v36  ;;  %v789_v36 = vpack.c.bf16 %v4366_v4, %v4322_v50  ;;  %v792_v50 = vpack.c.bf16 %v3128_v43, %v4471_v48  ;;  %v3865_v4 = vld [vmem:[%s5042_s4 + $0x40] sm:$0xff]   ;;  %v3872_v48 = vld [vmem:[%s5042_s4 + $0x50] sm:$0xff]  }
  0x70   : > { %1490 = vmatprep.mubr.bf16.mxu1 %v729_v40  ;;  %v790_v40 = vpack.c.bf16 %v4416_v24, %v4371_v6  ;;  %v3867_v6 = vld [vmem:[%s5042_s4 + $0xc0] sm:$0xff]   ;;  %v3868_v24 = vld [vmem:[%s5042_s4 + $0x48] sm:$0xff]  }
  0x71   : > { %3412 = vmatpush3.bf16.msra.mxu0 %v3846_v33  ;;  %v3096_v33 = vld [vmem:[%s4306_s23 + $0x220] sm:$0xff] }
  0x72   : > { %3452 = vmatpush3.bf16.msra.mxu1 %v3848_v42  ;;  %3413 = vmatprep.subr.bf16.mxu0 %v3849_v52  ;;  %v742_v38 = vpack.c.bf16 %v3096_v33, %v3095_v32  ;;  %v791_v42 = vpack.c.bf16 %v4468_v47, %v4419_v25  ;;  %v3869_v25 = vld [vmem:[%s5042_s4 + $0x80] sm:$0xff]   ;;  %v3871_v47 = vld [vmem:[%s5042_s4 + $0xc8] sm:$0xff]   ;;  %v3875_v52 = vld [vmem:[%s5042_s4 + $0xd0] sm:$0xff]  }
  0x73   : > { %3453 = vmatprep.subr.bf16.mxu1 %v3851_v41  ;;  %v3877_v41 = vld [vmem:[%s5042_s4 + $0x90] sm:$0xff]  }
  0x74   : > { %1426 = vmatmul.mubr.bf16.gmra.mrb[12].mxu0 %v691_v45  ;;  %v3870_v45 = vld [vmem:[%s5042_s4 + $0x8] sm:$0xff]  }
  0x75   : > { %1491 = vmatmul.mubr.bf16.gmra.mrb[12].mxu1 %v716_v51  ;;  %3414 = vmatpush3.bf16.msra.mxu0 %v3850_v53  ;;  %v3874_v51 = vld [vmem:[%s5042_s4 + $0x10] sm:$0xff]   ;;  %v3876_v53 = vld [vmem:[%s5042_s4 + $0x58] sm:$0xff]  }
  0x76   : > { %1596 = vmatprep.mubr.bf16.mxu1 %v777_v49  ;;  %3454 = vmatpush3.bf16.msra.mxu1 %v3852_v54  ;;  %v3873_v49 = vld [vmem:[%s5042_s4 + $0x88] sm:$0xff]   ;;  %v3878_v54 = vld [vmem:[%s5042_s4 + $0x18] sm:$0xff]  }
  0x77   : > { %3415 = vmatprep.subr.bf16.mxu0 %v3853_v55  ;;  %3455 = vmatprep.subr.bf16.mxu1 %v3855_v57  ;;  %v3879_v55 = vld [vmem:[%s5042_s4 + $0xd8] sm:$0xff]   ;;  %v3969_v57 = vmov 0.0  }
  0x78   : > { %1531 = vmatprep.mubr.bf16.mxu0 %v751_v61  ;;  %1738 = vst [vmem:[#allocation2 + $0x30] sm:$0xff] %v3969_v57  ;;  %1739 = vst [vmem:[#allocation2 + $0x38] sm:$0x3] %v3969_v57  ;;  %v3883_v61 = vld [vmem:[%s5042_s4 + $0xe0] sm:$0xff]  }
  0x79   : > { %3416 = vmatpush3.bf16.msra.mxu0 %v3854_v56  ;;  %v3880_v56 = vld [vmem:[%s5042_s4 + $0x60] sm:$0xff]   ;;  %1732 = vst [vmem:[#allocation2] sm:$0xff] %v3969_v57  ;;  %1733 = vst [vmem:[#allocation2 + $0x8] sm:$0x3] %v3969_v57 }
  0x7a   : > { %3456 = vmatpush3.bf16.msra.mxu1 %v3856_v62  ;;  %3677 = vmatprep.subr.bf16.mxu0 %v3857_v5  ;;  %1734 = vst [vmem:[#allocation2 + $0x10] sm:$0xff] %v3969_v57  ;;  %1735 = vst [vmem:[#allocation2 + $0x18] sm:$0x3] %v3969_v57  ;;  %v3884_v62 = vld [vmem:[%s5042_s4 + $0x68] sm:$0xff]  }
  0x7b   : > { %3493 = vmatprep.subr.bf16.mxu1 %v3865_v4  ;;  %1736 = vst [vmem:[#allocation2 + $0x20] sm:$0xff] %v3969_v57  ;;  %1737 = vst [vmem:[#allocation2 + $0x28] sm:$0x3] %v3969_v57 }
  0x7c   : > { %1532 = vmatmul.mubr.bf16.vlgmr.msra.gmra.mrb[16].mxu0 %v739_v1  ;;  %1740 = vst [vmem:[#allocation2 + $0x40] sm:$0xff] %v3969_v57  ;;  %1741 = vst [vmem:[#allocation2 + $0x48] sm:$0x3] %v3969_v57  ;;  %v3887_v1 = vld [vmem:[%s5042_s4 + $0xe8] sm:$0xff]  }
  0x7d   : > { %3678 = vmatpush3.bf16.msra.mxu0 %v3857_v5  ;;  %1597 = vmatmul.mubr.bf16.vlgmr.msra.gmra.mrb[16].mxu1 %v764_v7  ;;  %1742 = vst [vmem:[#allocation2 + $0x50] sm:$0xff] %v3969_v57  ;;  %1743 = vst [vmem:[#allocation2 + $0x58] sm:$0x3] %v3969_v57  ;;  %v3888_v5 = vld [vmem:[%s5042_s4 + $0x70] sm:$0xff]   ;;  %v3889_v7 = vld [vmem:[%s5042_s4 + $0xa8] sm:$0xff]  }
  0x7e   : > { %3679 = vmatprep.subr.bf16.mxu0 %v3858_v8  ;;  %1539 = vmatprep.mubr.bf16.mxu0 %v752_v13  ;;  %1744 = vst [vmem:[#allocation2 + $0x60] sm:$0xff] %v3969_v57  ;;  %1745 = vst [vmem:[#allocation2 + $0x68] sm:$0x3] %v3969_v57  ;;  %v3895_v13 = vld [vmem:[%s5042_s4 + $0xf8] sm:$0xff]  }
  0x7f   : > { %1604 = vmatprep.mubr.bf16.mxu1 %v778_v9  ;;  %3494 = vmatpush3.bf16.msra.mxu1 %v3866_v44  ;;  %1746 = vst [vmem:[#allocation2 + $0x70] sm:$0xff] %v3969_v57  ;;  %1747 = vst [vmem:[#allocation2 + $0x78] sm:$0x3] %v3969_v57  ;;  %v3891_v9 = vld [vmem:[%s5042_s4 + $0xf0] sm:$0xff]  }
  0x80   : > { %3495 = vmatprep.subr.bf16.mxu1 %v3868_v24  ;;  %1748 = vst [vmem:[#allocation2 + $0x80] sm:$0xff] %v3969_v57  ;;  %1749 = vst [vmem:[#allocation2 + $0x88] sm:$0x3] %v3969_v57 }
  0x81   : > { %3680 = vmatpush3.bf16.msra.mxu0 %v3858_v8  ;;  %1750 = vst [vmem:[#allocation2 + $0x90] sm:$0xff] %v3969_v57  ;;  %1751 = vst [vmem:[#allocation2 + $0x98] sm:$0x3] %v3969_v57  ;;  %v3890_v8 = vld [vmem:[%s5042_s4 + $0x30] sm:$0xff]  }
  0x82   : > { %3681 = vmatprep.subr.bf16.mxu0 %v3859_v2 }
  0x83   : > { %3496 = vmatpush3.bf16.msra.mxu1 %v3870_v45 }
  0x84   : > { %1540 = vmatmul.mubr.bf16.gmra.mrb[20].mxu0 %v740_v15  ;;  %3497 = vmatprep.subr.bf16.mxu1 %v3872_v48 }
  0x85   : > { %3682 = vmatpush3.bf16.msra.mxu0 %v3859_v2  ;;  %1547 = vmatprep.mubr.bf16.mxu0 %v753_v17  ;;  %v3896_v2 = vld [vmem:[%s5042_s4 + $0xb8] sm:$0xff]  }
  0x86   : > { %1605 = vmatmul.mubr.bf16.gmra.mrb[20].mxu1 %v765_v18  ;;  %3683 = vmatprep.subr.bf16.mxu0 %v3860_v19 }
  0x87   : > { %1612 = vmatprep.mubr.bf16.mxu1 %v779_v21  ;;  %3498 = vmatpush3.bf16.msra.mxu1 %v3874_v51 }
  0x88   : > { %3499 = vmatprep.subr.bf16.mxu1 %v3876_v53 }
  0x89   : > { %3684 = vmatpush3.bf16.msra.mxu0 %v3860_v19 }
  0x8a   : > { %3685 = vmatprep.subr.bf16.mxu0 %v3861_v27 }
  0x8b   : > { %3500 = vmatpush3.bf16.msra.mxu1 %v3878_v54 }
  0x8c   : > { %1548 = vmatmul.mubr.bf16.gmra.mrb[24].mxu0 %v741_v29  ;;  %3501 = vmatprep.subr.bf16.mxu1 %v3880_v56 }
  0x8d   : > { %3686 = vmatpush3.bf16.msra.mxu0 %v3861_v27  ;;  %1555 = vmatprep.mubr.bf16.mxu0 %v754_v30 }
  0x8e   : > { %1613 = vmatmul.mubr.bf16.gmra.mrb[24].mxu1 %v766_v31  ;;  %3687 = vmatprep.subr.bf16.mxu0 %v3862_v16 }
  0x8f   : > { %1620 = vmatprep.mubr.bf16.mxu1 %v780_v34  ;;  %3502 = vmatpush3.bf16.msra.mxu1 %v3882_v59 }
  0x90   : > { %3503 = vmatprep.subr.bf16.mxu1 %v3884_v62 }
  0x91   : > { %3688 = vmatpush3.bf16.msra.mxu0 %v3862_v16 }
  0x92   : > { %3689 = vmatprep.subr.bf16.mxu0 %v3863_v35 }
  0x93   : > { %3504 = vmatpush3.bf16.msra.mxu1 %v3886_v0 }
  0x94   : > { %1556 = vmatmul.mubr.bf16.gmra.mrb[28].mxu0 %v742_v38  ;;  %3505 = vmatprep.subr.bf16.mxu1 %v3888_v5 }
  0x95   : > { %3690 = vmatpush3.bf16.msra.mxu0 %v3863_v35  ;;  %3693 = vmatprep.mubr.bf16.mxu0 %v789_v36 }
  0x96   : > { %1621 = vmatmul.mubr.bf16.gmra.mrb[28].mxu1 %v767_v39  ;;  %3691 = vmatprep.subr.bf16.mxu0 %v3864_v23 }
  0x97   : > { %3506 = vmatpush3.bf16.msra.mxu1 %v3890_v8 }
  0x98   : > { %3507 = vmatprep.subr.bf16.mxu1 %v3892_v10 }
  0x99   : > { %3692 = vmatpush3.bf16.msra.mxu0 %v3864_v23 }
  0x9a   : > { %3533 = vmatprep.subr.bf16.mxu0 %v3867_v6 }
  0x9b   : > { %3508 = vmatpush3.bf16.msra.mxu1 %v3894_v12 }
  0x9c   : > { %3694 = vmatmul.mubr.bf16.vlgmr.msra.gmra.mrb[32].mxu0 %v790_v40  ;;  %3573 = vmatprep.subr.bf16.mxu1 %v3897_v46 }
  0x9d   : > { %3697 = vmatprep.mubr.bf16.mxu0 %v791_v42  ;;  %3534 = vmatpush3.bf16.msra.mxu0 %v3869_v25 }
  0x9e   : > { %3535 = vmatprep.subr.bf16.mxu0 %v3871_v47 }
  0xa1   : > { %3536 = vmatpush3.bf16.msra.mxu0 %v3873_v49 }
  0xa2   : > { %3537 = vmatprep.subr.bf16.mxu0 %v3875_v52 }
  0xa4   : > { %3698 = vmatmul.mubr.bf16.gmra.mrb[36].mxu0 %v792_v50 }
  0xa5   : > { %3538 = vmatpush3.bf16.msra.mxu0 %v3877_v41 }
  0xa6   : > { %3539 = vmatprep.subr.bf16.mxu0 %v3879_v55 }
  0xa9   : > { %3540 = vmatpush3.bf16.msra.mxu0 %v3881_v58 }
  0xaa   : > { %3541 = vmatprep.subr.bf16.mxu0 %v3883_v61 }
  0xad   : > { %3542 = vmatpush3.bf16.msra.mxu0 %v3885_v63 }
  0xae   : > { %3543 = vmatprep.subr.bf16.mxu0 %v3887_v1 }
  0xb1   : > { %3544 = vmatpush3.bf16.msra.mxu0 %v3889_v7 }
  0xb2   : > { %3545 = vmatprep.subr.bf16.mxu0 %v3891_v9 }
  0xb5   : > { %3546 = vmatpush3.bf16.msra.mxu0 %v3893_v11 }
  0xb6   : > { %3547 = vmatprep.subr.bf16.mxu0 %v3895_v13 }
  0xb9   : > { %3548 = vmatpush3.bf16.msra.mxu0 %v3896_v2 }
  0xba   : > { %3613 = vmatprep.subr.bf16.mxu0 %v3899_v60 }
 0x12f   : > { %v3337_v14 = vpop.f32.mrb[0].mxu0 }
 0x130   : > { %v3377_v15 = vpop.f32.mrb[0].mxu1  ;;  %v3338_v17 = vpop.f32.mrb[1].mxu0 }
 0x131   : > { %v3339_v18 = vadd.f32 %v3338_v17, %v3337_v14  ;;  %v3378_v19 = vpop.f32.mrb[1].mxu1  ;;  %v3340_v20 = vpop.f32.mrb[2].mxu0 }
 0x132   : > { %v3379_v21 = vadd.f32 %v3378_v19, %v3377_v15  ;;  %v3380_v26 = vpop.f32.mrb[2].mxu1  ;;  %v3341_v27 = vpop.f32.mrb[3].mxu0 }
 0x133   : > { %v3342_v28 = vadd.f32 %v3341_v27, %v3340_v20  ;;  %v3381_v3 = vpop.f32.mrb[3].mxu1 }
 0x134   : > { %v1469_v22 = vadd.f32 %v3379_v21, %v3339_v18  ;;  %v3382_v29 = vadd.f32 %v3381_v3, %v3380_v26 }
 0x136   : > { %v1472_v16 = vadd.f32 %v3382_v29, %v3342_v28 }
 0x137   : > { %v3343_v30 = vpop.f32.mrb[4].mxu0 }
 0x138   : > { %v3383_v31 = vpop.f32.mrb[4].mxu1  ;;  %v3344_v32 = vpop.f32.mrb[5].mxu0 }
 0x139   : > { %v3345_v33 = vadd.f32 %v3344_v32, %v3343_v30  ;;  %v3384_v34 = vpop.f32.mrb[5].mxu1  ;;  %v3346_v35 = vpop.f32.mrb[6].mxu0 }
 0x13a   : > { %v3385_v37 = vadd.f32 %v3384_v34, %v3383_v31  ;;  %v3386_v38 = vpop.f32.mrb[6].mxu1  ;;  %v3347_v23 = vpop.f32.mrb[7].mxu0 }
 0x13b   : > { %v3348_v36 = vadd.f32 %v3347_v23, %v3346_v35  ;;  %v3387_v39 = vpop.f32.mrb[7].mxu1 }
 0x13c   : > { %v1477_v40 = vadd.f32 %v3385_v37, %v3345_v33  ;;  %v3388_v42 = vadd.f32 %v3387_v39, %v3386_v38 }
 0x13e   : > { %v1480_v43 = vadd.f32 %v3388_v42, %v3348_v36 }
 0x13f   : > { %v3349_v50 = vpop.f32.mrb[8].mxu0 }
 0x140   : > { %v3389_v4 = vpop.f32.mrb[8].mxu1  ;;  %v3350_v44 = vpop.f32.mrb[9].mxu0 }
 0x141   : > { %v3390_v6 = vpop.f32.mrb[9].mxu1  ;;  %v3351_v24 = vadd.f32 %v3350_v44, %v3349_v50  ;;  %v3352_v45 = vpop.f32.mrb[10].mxu0 }
 0x142   : > { %v3391_v25 = vadd.f32 %v3390_v6, %v3389_v4  ;;  %v3392_v47 = vpop.f32.mrb[10].mxu1  ;;  %v3353_v48 = vpop.f32.mrb[11].mxu0 }
 0x143   : > { %v3393_v49 = vpop.f32.mrb[11].mxu1  ;;  %v3354_v52 = vadd.f32 %v3353_v48, %v3352_v45 }
 0x144   : > { %v1485_v51 = vadd.f32 %v3391_v25, %v3351_v24  ;;  %v3394_v53 = vadd.f32 %v3393_v49, %v3392_v47 }
 0x146   : > { %v1488_v41 = vadd.f32 %v3394_v53, %v3354_v52 }
 0x147   : > { %v3355_v54 = vpop.f32.mrb[12].mxu0 }
 0x148   : > { %v3395_v55 = vpop.f32.mrb[12].mxu1  ;;  %v3356_v56 = vpop.f32.mrb[13].mxu0 }
 0x149   : > { %v3357_v58 = vadd.f32 %v3356_v56, %v3355_v54  ;;  %v3396_v59 = vpop.f32.mrb[13].mxu1  ;;  %v3358_v61 = vpop.f32.mrb[14].mxu0 }
 0x14a   : > { %v3397_v62 = vadd.f32 %v3396_v59, %v3395_v55  ;;  %v3398_v63 = vpop.f32.mrb[14].mxu1  ;;  %v3359_v0 = vpop.f32.mrb[15].mxu0 }
 0x14b   : > { %v3360_v1 = vadd.f32 %v3359_v0, %v3358_v61  ;;  %v3399_v5 = vpop.f32.mrb[15].mxu1 }
 0x14c   : > { %v1493_v7 = vadd.f32 %v3397_v62, %v3357_v58  ;;  %v3400_v8 = vadd.f32 %v3399_v5, %v3398_v63 }
 0x14e   : > { %v1496_v9 = vadd.f32 %v3400_v8, %v3360_v1 }
 0x14f   : > { %v3417_v10 = vpop.f32.mrb[16].mxu0 }
 0x150   : > { %v3418_v11 = vpop.f32.mrb[17].mxu0  ;;  %v3457_v46 = vpop.f32.mrb[16].mxu1 }
 0x151   : > { %v3419_v12 = vadd.f32 %v3418_v11, %v3417_v10  ;;  %v3420_v13 = vpop.f32.mrb[18].mxu0  ;;  %v3458_v60 = vpop.f32.mrb[17].mxu1 }
 0x152   : > { %v3421_v2 = vpop.f32.mrb[19].mxu0  ;;  %v3459_v17 = vadd.f32 %v3458_v60, %v3457_v46  ;;  %v3460_v18 = vpop.f32.mrb[18].mxu1 }
 0x153   : > { %v1534_v14 = vadd.f32 %v3419_v12, %v1469_v22  ;;  %v3422_v15 = vadd.f32 %v3421_v2, %v3420_v13  ;;  %v3461_v19 = vpop.f32.mrb[19].mxu1 }
 0x154   : > { %v3462_v21 = vadd.f32 %v3461_v19, %v3460_v18 }
 0x155   : > { %v1537_v20 = vadd.f32 %v3422_v15, %v1472_v16  ;;  %v1599_v26 = vadd.f32 %v3459_v17, %v1534_v14  ;;  %v3202_v14 = vld [vmem:[%s5041_s3] ss:$0 sm:$0xff] }
 0x157   : > { %v3423_v27 = vpop.f32.mrb[20].mxu0  ;;  %v1602_v28 = vadd.f32 %v3462_v21, %v1537_v20 }
 0x158   : > { %v3424_v3 = vpop.f32.mrb[21].mxu0 }
 0x159   : > { %v3425_v29 = vadd.f32 %v3424_v3, %v3423_v27  ;;  %v3426_v30 = vpop.f32.mrb[22].mxu0  ;;  %v3463_v31 = vpop.f32.mrb[20].mxu1 }
 0x15a   : > { %v3427_v32 = vpop.f32.mrb[23].mxu0  ;;  %v3464_v33 = vpop.f32.mrb[21].mxu1 }
 0x15b   : > { %v1542_v34 = vadd.f32 %v3425_v29, %v1477_v40  ;;  %v3428_v35 = vadd.f32 %v3427_v32, %v3426_v30  ;;  %v3465_v37 = vadd.f32 %v3464_v33, %v3463_v31  ;;  %v3466_v38 = vpop.f32.mrb[22].mxu1  ;;  %v1773_v32 = vld [vmem:[#allocation2 + $0x1] sm:$0xff] }
 0x15c   : > { %v3467_v22 = vpop.f32.mrb[23].mxu1 }
 0x15d   : > { %v1545_v23 = vadd.f32 %v3428_v35, %v1480_v43  ;;  %v3468_v36 = vadd.f32 %v3467_v22, %v3466_v38  ;;  %v1607_v39 = vadd.f32 %v3465_v37, %v1542_v34 }
 0x15f   : > { %v3429_v42 = vpop.f32.mrb[24].mxu0  ;;  %v1610_v16 = vadd.f32 %v3468_v36, %v1545_v23 }
 0x160   : > { %v3430_v50 = vpop.f32.mrb[25].mxu0 }
 0x161   : > { %v3431_v4 = vadd.f32 %v3430_v50, %v3429_v42  ;;  %v3432_v44 = vpop.f32.mrb[26].mxu0  ;;  %v3469_v6 = vpop.f32.mrb[24].mxu1 }
 0x162   : > { %v3433_v24 = vpop.f32.mrb[27].mxu0  ;;  %v3470_v25 = vpop.f32.mrb[25].mxu1 }
 0x163   : > { %v1550_v45 = vadd.f32 %v3431_v4, %v1485_v51  ;;  %v3434_v47 = vadd.f32 %v3433_v24, %v3432_v44  ;;  %v3471_v48 = vadd.f32 %v3470_v25, %v3469_v6  ;;  %v3472_v49 = vpop.f32.mrb[26].mxu1 }
 0x164   : > { %v3473_v40 = vpop.f32.mrb[27].mxu1 }
 0x165   : > { %v1553_v52 = vadd.f32 %v3434_v47, %v1488_v41  ;;  %v3474_v53 = vadd.f32 %v3473_v40, %v3472_v49  ;;  %v1615_v54 = vadd.f32 %v3471_v48, %v1550_v45  ;;  %v3201_v41 = vld [vmem:[%s5040_s2] ss:$0 sm:$0xff] }
 0x167   : > { %v3435_v55 = vpop.f32.mrb[28].mxu0  ;;  %v1618_v43 = vadd.f32 %v3474_v53, %v1553_v52 }
 0x168   : > { %v3436_v56 = vpop.f32.mrb[29].mxu0 }
 0x169   : > { %v3437_v58 = vadd.f32 %v3436_v56, %v3435_v55  ;;  %v3438_v59 = vpop.f32.mrb[30].mxu0  ;;  %v3475_v61 = vpop.f32.mrb[28].mxu1 }
 0x16a   : > { %v3439_v62 = vpop.f32.mrb[31].mxu0  ;;  %v3476_v63 = vpop.f32.mrb[29].mxu1 }
 0x16b   : > { %v1558_v0 = vadd.f32 %v3437_v58, %v1493_v7  ;;  %v3440_v1 = vadd.f32 %v3439_v62, %v3438_v59  ;;  %v3477_v5 = vadd.f32 %v3476_v63, %v3475_v61  ;;  %v3478_v8 = vpop.f32.mrb[30].mxu1  ;;  %v1785_v59 = vld [vmem:[#allocation2 + $0x2] sm:$0xff] }
 0x16c   : > { %v3479_v51 = vpop.f32.mrb[31].mxu1  ;;  %v3900_v62 = vld [vmem:[%s5042_s4 + $0x148] sm:$0xff]  }
 0x16d   : > { %v1561_v10 = vadd.f32 %v3440_v1, %v1496_v9  ;;  %v3480_v11 = vadd.f32 %v3479_v51, %v3478_v8  ;;  %v1623_v12 = vadd.f32 %v3477_v5, %v1558_v0  ;;  %v3901_v51 = vld [vmem:[%s5042_s4 + $0x180] sm:$0xff]  }
 0x16f   : > { %v3695_v13 = vpop.f32.mrb[32].mxu0  ;;  %v1626_v46 = vadd.f32 %v3480_v11, %v1561_v10 }
 0x170   : > { %v1672_v2 = vadd.f32 %v3695_v13, %v1607_v39  ;;  %v1663_v60 = vpop.f32.mrb[33].mxu0  ;;  %v3902_v13 = vld [vmem:[%s5042_s4 + $0x108] sm:$0xff]  }
 0x171   : > { %v1664_v7 = vadd.f32 %v1663_v60, %v1599_v26  ;;  %v3696_v15 = vpop.f32.mrb[34].mxu0  ;;  %v3904_v60 = vld [vmem:[%s5042_s4 + $0x150] sm:$0xff]  }
 0x172   : > { %v1703_v17 = vmul.f32 %v3201_v41, %v1672_v2  ;;  %v1675_v18 = vadd.f32 %v3696_v15, %v1610_v16  ;;  %v1666_v19 = vpop.f32.mrb[35].mxu0 }
 0x173   : > { %v1701_v9 = vmul.f32 %v3201_v41, %v1664_v7  ;;  %v1667_v20 = vadd.f32 %v1666_v19, %v1602_v28  ;;  %v3906_v7 = vld [vmem:[%s5042_s4 + $0x110] sm:$0xff]   ;;  %v3908_v19 = vld [vmem:[%s5042_s4 + $0x158] sm:$0xff]  }
 0x174   : > { %v1718_v21 = vadd.f32 %v3202_v14, %v1703_v17  ;;  %v1704_v27 = vmul.f32 %v3201_v41, %v1675_v18  ;;  %v3907_v18 = vld [vmem:[%s5042_s4 + $0x1d0] sm:$0xff]  }
 0x175   : > { %v1716_v3 = vadd.f32 %v3202_v14, %v1701_v9  ;;  %v1702_v29 = vmul.f32 %v3201_v41, %v1667_v20 }
 0x176   : > { %v4691_v30 = vmax.f32 %v1718_v21, 0.0  ;;  %v1719_v31 = vadd.f32 %v3202_v14, %v1704_v27  ;;  %v3909_v21 = vld [vmem:[%s5042_s4 + $0x190] sm:$0xff]  }
 0x177   : > { %v4693_v33 = vmax.f32 %v1716_v3, 0.0  ;;  %v1717_v34 = vadd.f32 %v3202_v14, %v1702_v29  ;;  %v3699_v35 = vpop.f32.mrb[36].mxu0  ;;  %v3910_v29 = vld [vmem:[%s5042_s4 + $0x118] sm:$0xff]  }
 0x178   : > { %1755 = vst [vmem:[#allocation2 + $0x31] sm:$0xff] %v4691_v30  ;;  %v4696_v26 = vmax.f32 %v1719_v31, 0.0  ;;  %v1688_v37 = vadd.f32 %v3699_v35, %v1623_v12  ;;  %v1679_v38 = vpop.f32.mrb[37].mxu0  ;;  %v3911_v31 = vld [vmem:[%s5042_s4 + $0x1d8] sm:$0xff]  }
 0x179   : > { %1753 = vst [vmem:[#allocation2 + $0x11] sm:$0xff] %v4693_v33  ;;  %v4699_v28 = vmax.f32 %v1717_v34, 0.0  ;;  %v1680_v22 = vadd.f32 %v1679_v38, %v1615_v54  ;;  %v3700_v23 = vpop.f32.mrb[38].mxu0  ;;  %v1781_v36 = vpack.c.bf16 %v4693_v33, %v1773_v32  ;;  %v3912_v34 = vld [vmem:[%s5042_s4 + $0x160] sm:$0xff]   ;;  %v3913_v35 = vld [vmem:[%s5042_s4 + $0x198] sm:$0xff]  }
 0x17a   : > { %1756 = vst [vmem:[#allocation2 + $0x41] sm:$0xff] %v4696_v26  ;;  %v1707_v39 = vmul.f32 %v3201_v41, %v1688_v37  ;;  %v1691_v42 = vadd.f32 %v3700_v23, %v1626_v46  ;;  %v1682_v16 = vpop.f32.mrb[39].mxu0  ;;  %v1818_v50 = vpack.c.bf16 %v4696_v26, %v4691_v30  ;;  %v3914_v37 = vld [vmem:[%s5042_s4 + $0x120] sm:$0xff]  }
 0x17b   : > { %1754 = vst [vmem:[#allocation2 + $0x21] sm:$0xff] %v4699_v28  ;;  %v1705_v4 = vmul.f32 %v3201_v41, %v1680_v22  ;;  %v1683_v44 = vadd.f32 %v1682_v16, %v1618_v43  ;;  %2478 = vmatprep.mubr.bf16.mxu1 %v1781_v36  ;;  %v4708_v6 = vpack.c.bf16 %v4691_v30, %v4699_v28  ;;  %v3898_v43 = vld [vmem:[%s5042_s4 + $0x100] sm:$0xff]   ;;  %v3916_v36 = vld [vmem:[%s5042_s4 + $0x168] sm:$0xff]  }
 0x17c   : > { %v1817_v24 = vpack.c.bf16 %v4699_v28, %v4693_v33  ;;  %v1722_v25 = vadd.f32 %v3202_v14, %v1707_v39  ;;  %v1708_v45 = vmul.f32 %v3201_v41, %v1691_v42  ;;  %v3915_v23 = vld [vmem:[%s5042_s4 + $0x1e0] sm:$0xff]   ;;  %v3934_v33 = vld [vmem:[%s5042_s4 + $0x218] sm:$0xff]   ;;  %v4900_v28 = vld [vmem:[%s5045_s7 + $0x10] sm:$0xff]  }
 0x17d   : > { %v1720_v47 = vadd.f32 %v3202_v14, %v1705_v4  ;;  %v1706_v48 = vmul.f32 %v3201_v41, %v1683_v44  ;;  %v3903_v41 = vld [vmem:[%s5042_s4 + $0x1c8] sm:$0xff]   ;;  %v3917_v16 = vld [vmem:[%s5042_s4 + $0x1a0] sm:$0xff]  }
 0x17e   : > { %v4712_v49 = vmax.f32 %v1722_v25, 0.0  ;;  %v1723_v40 = vadd.f32 %v3202_v14, %v1708_v45  ;;  %v3918_v25 = vld [vmem:[%s5042_s4 + $0x128] sm:$0xff]  }
 0x17f   : > { %v4714_v52 = vmax.f32 %v1720_v47, 0.0  ;;  %v1721_v53 = vadd.f32 %v3202_v14, %v1706_v48  ;;  %v1799_v12 = vld [vmem:[#allocation2 + $0x30] sm:$0xff]  ;;  %v3905_v14 = vld [vmem:[%s5042_s4 + $0x188] sm:$0xff]  }
 0x180   : > { %1759 = vst [vmem:[#allocation2 + $0x71] sm:$0xff] %v4712_v49  ;;  %v4717_v54 = vmax.f32 %v1723_v40, 0.0  ;;  %v1762_v55 = vld [vmem:[#allocation2 + $0x10] sm:$0xff]  ;;  %v3919_v45 = vld [vmem:[%s5042_s4 + $0x1e8] sm:$0xff]  }
 0x181   : > { %1757 = vst [vmem:[#allocation2 + $0x51] sm:$0xff] %v4714_v52  ;;  %v4723_v56 = vmax.f32 %v1721_v53, 0.0  ;;  %v1769_v58 = vpack.c.bf16 %v1762_v55, %v3969_v57  ;;  %v4726_v61 = vld [vmem:[#allocation2 + $0x12] sm:$0xff]  ;;  %v4733_v63 = vpack.c.bf16 %v4714_v52, %v4696_v26  ;;  %v1800_v1 = vld [vmem:[#allocation2 + $0x40] sm:$0xff]  ;;  %v3921_v40 = vld [vmem:[%s5042_s4 + $0x1a8] sm:$0xff]  }
 0x182   : > { %1760 = vst [vmem:[#allocation2 + $0x81] sm:$0xff] %v4717_v54  ;;  %v1798_v0 = vld [vmem:[#allocation2 + $0x20] sm:$0xff]  ;;  %v1820_v5 = vpack.c.bf16 %v4717_v54, %v4712_v49  ;;  %v1793_v11 = vpack.c.bf16 %v4726_v61, %v1785_v59  ;;  %v1806_v2 = vpack.c.bf16 %v1800_v1, %v1799_v12  ;;  %v4776_v20 = vld [vmem:[#allocation2 + $0x32] sm:$0xff]  ;;  %v3938_v26 = vld [vmem:[%s5042_s4 + $0x228] sm:$0xff]  }
 0x183   : > { %1758 = vst [vmem:[#allocation2 + $0x61] sm:$0xff] %v4723_v56  ;;  %2479 = vmatmul.mubr.bf16.vlgmr.msra.gmra.mrb[32].mxu1 %v1769_v58  ;;  %v1805_v8 = vpack.c.bf16 %v1798_v0, %v1762_v55  ;;  %v4744_v10 = vpack.c.bf16 %v4712_v49, %v4723_v56  ;;  %v1819_v46 = vpack.c.bf16 %v4723_v56, %v4714_v52  ;;  %v4767_v17 = vld [vmem:[#allocation2 + $0x22] sm:$0xff]  ;;  %v3920_v48 = vld [vmem:[%s5042_s4 + $0x170] sm:$0xff]   ;;  %v3924_v59 = vld [vmem:[%s5042_s4 + $0x178] sm:$0xff]  }
 0x184   : > { %3574 = vmatpush3.bf16.msra.mxu1 %v3898_v43  ;;  %2486 = vmatprep.mubr.bf16.mxu1 %v4708_v6  ;;  %v4765_v15 = vpack.c.bf16 %v1799_v12, %v1798_v0  ;;  %v4784_v27 = vpack.c.bf16 %v4776_v20, %v4767_v17  ;;  %v1789_v42 = vld [vmem:[#allocation2 + $0x42] sm:$0xff]  ;;  %v3922_v53 = vld [vmem:[%s5042_s4 + $0x130] sm:$0xff]   ;;  %v3928_v12 = vld [vmem:[%s5042_s4 + $0x1b8] sm:$0xff]  }
 0x185   : > { %2543 = vmatprep.mubr.bf16.mxu0 %v1805_v8  ;;  %3575 = vmatprep.subr.bf16.mxu1 %v3900_v62  ;;  %v3923_v58 = vld [vmem:[%s5042_s4 + $0x1f0] sm:$0xff]   ;;  %v1829_v62 = vpack.c.bf16 %v4767_v17, %v4726_v61  ;;  %v3927_v61 = vld [vmem:[%s5042_s4 + $0x1f8] sm:$0xff]   ;;  %v3278_v56 = vld [vmem:[%s4306_s23 + $0x1c0] sm:$0xff] }
 0x186   : > { %2544 = vmatmul.mubr.bf16.vlgmr.msra.gmra.mrb[40].mxu0 %v1793_v11  ;;  %v3929_v11 = vld [vmem:[%s5042_s4 + $0x200] sm:$0xff]   ;;  %v3277_v52 = vld [vmem:[%s4306_s23 + $0x1b0] sm:$0xff] }
 0x187   : > { %2551 = vmatprep.mubr.bf16.mxu0 %v1806_v2  ;;  %3614 = vmatpush3.bf16.msra.mxu0 %v3901_v51  ;;  %v1803_v44 = vld [vmem:[#allocation2 + $0x70] sm:$0xff]  ;;  %v3926_v51 = vld [vmem:[%s5042_s4 + $0x138] sm:$0xff]   ;;  %v1830_v2 = vpack.c.bf16 %v1789_v42, %v4776_v20 }
 0x188   : > { %3576 = vmatpush3.bf16.msra.mxu1 %v3902_v13  ;;  %3615 = vmatprep.subr.bf16.mxu0 %v3903_v41  ;;  %v1801_v3 = vld [vmem:[#allocation2 + $0x50] sm:$0xff]  ;;  %v3930_v13 = vld [vmem:[%s5042_s4 + $0x208] sm:$0xff]   ;;  %v4875_v41 = vld [vmem:[%s5045_s7] sm:$0xff]  }
 0x189   : > { %3577 = vmatprep.subr.bf16.mxu1 %v3904_v60  ;;  %v4802_v38 = vpack.c.bf16 %v1801_v3, %v1800_v1  ;;  %v4804_v22 = vld [vmem:[#allocation2 + $0x52] sm:$0xff]  ;;  %v4812_v39 = vld [vmem:[#allocation2 + $0x80] sm:$0xff] }
 0x18a   : > { %v1802_v9 = vld [vmem:[#allocation2 + $0x60] sm:$0xff]  ;;  %v4820_v4 = vpack.c.bf16 %v4804_v22, %v1789_v42  ;;  %v1808_v47 = vpack.c.bf16 %v4812_v39, %v1803_v44  ;;  %v1792_v0 = vld [vmem:[#allocation2 + $0x72] sm:$0xff]  ;;  %v1845_v20 = vpack.c.bf16 %v3969_v57, %v4812_v39 }
 0x18b   : > { %3616 = vmatpush3.bf16.msra.mxu0 %v3905_v14  ;;  %2487 = vmatmul.mubr.bf16.gmra.mrb[36].mxu1 %v4765_v15  ;;  %v1807_v32 = vpack.c.bf16 %v1802_v9, %v1801_v3  ;;  %v4839_v55 = vpack.c.bf16 %v1803_v44, %v1802_v9  ;;  %v1791_v43 = vld [vmem:[#allocation2 + $0x62] sm:$0xff]  ;;  %v3925_v1 = vld [vmem:[%s5042_s4 + $0x1b0] sm:$0xff]   ;;  %v2817_v9 = vpack.c.bf16 %v3278_v56, %v3277_v52 }
 0x18c   : > { %3578 = vmatpush3.bf16.msra.mxu1 %v3906_v7  ;;  %2494 = vmatprep.mubr.bf16.mxu1 %v4733_v63  ;;  %v4853_v8 = vpack.c.bf16 %v1792_v0, %v1791_v43  ;;  %v3932_v60 = vld [vmem:[%s5042_s4 + $0x210] sm:$0xff]   ;;  %v3936_v14 = vld [vmem:[%s5042_s4 + $0x220] sm:$0xff]  }
 0x18d   : > { %3617 = vmatprep.subr.bf16.mxu0 %v3907_v18  ;;  %3579 = vmatprep.subr.bf16.mxu1 %v3908_v19  ;;  %v1828_v30 = vld [vmem:[#allocation2 + $0x82] sm:$0xff]  ;;  %v3940_v18 = vld [vmem:[%s5042_s4 + $0x230] sm:$0xff]  }
 0x18e   : > { %2552 = vmatmul.mubr.bf16.gmra.mrb[44].mxu0 %v4784_v27  ;;  %v1832_v7 = vpack.c.bf16 %v1828_v30, %v1792_v0  ;;  %v3943_v19 = vld [vmem:[%s5045_s7 + $0x30] sm:$0xff]  }
 0x18f   : > { %2559 = vmatprep.mubr.bf16.mxu0 %v1807_v32  ;;  %3618 = vmatpush3.bf16.msra.mxu0 %v3909_v21  ;;  %v3944_v21 = vld [vmem:[%s5045_s7 + $0x38] sm:$0xff]   ;;  %v3279_v49 = vld [vmem:[%s4306_s23 + $0x1d0] sm:$0xff] }
 0x190   : > { %3580 = vmatpush3.bf16.msra.mxu1 %v3910_v29  ;;  %3619 = vmatprep.subr.bf16.mxu0 %v3911_v31  ;;  %v3281_v57 = vld [vmem:[%s4306_s23 + $0x1f0] sm:$0xff] }
 0x191   : > { %3581 = vmatprep.subr.bf16.mxu1 %v3912_v34  ;;  %v1865_v3 = vld [vmem:[#allocation2 + $0x92] sm:$0xff]  ;;  %v3284_v34 = vld [vmem:[%s4306_s23 + $0x220] sm:$0xff] }
 0x192   : > { %v1869_v31 = vpack.c.bf16 %v1865_v3, %v1828_v30  ;;  %v3283_v32 = vld [vmem:[%s4306_s23 + $0x210] sm:$0xff] }
 0x193   : > { %3620 = vmatpush3.bf16.msra.mxu0 %v3913_v35  ;;  %2495 = vmatmul.mubr.bf16.gmra.mrb[40].mxu1 %v4802_v38  ;;  %v2820_v35 = vpack.c.bf16 %v3284_v34, %v3283_v32 }
 0x194   : > { %3582 = vmatpush3.bf16.msra.mxu1 %v3914_v37  ;;  %2502 = vmatprep.mubr.bf16.mxu1 %v4744_v10 }
 0x195   : > { %3621 = vmatprep.subr.bf16.mxu0 %v3915_v23  ;;  %3583 = vmatprep.subr.bf16.mxu1 %v3916_v36 }
 0x196   : > { %2560 = vmatmul.mubr.bf16.gmra.mrb[48].mxu0 %v4820_v4 }
 0x197   : > { %2567 = vmatprep.mubr.bf16.mxu0 %v1808_v47  ;;  %3622 = vmatpush3.bf16.msra.mxu0 %v3917_v16 }
 0x198   : > { %3584 = vmatpush3.bf16.msra.mxu1 %v3918_v25  ;;  %3623 = vmatprep.subr.bf16.mxu0 %v3919_v45 }
 0x199   : > { %3585 = vmatprep.subr.bf16.mxu1 %v3920_v48 }
 0x19b   : > { %3624 = vmatpush3.bf16.msra.mxu0 %v3921_v40  ;;  %2503 = vmatmul.mubr.bf16.gmra.mrb[44].mxu1 %v4839_v55 }
 0x19c   : > { %3586 = vmatpush3.bf16.msra.mxu1 %v3922_v53  ;;  %2608 = vmatprep.mubr.bf16.mxu1 %v1829_v62 }
 0x19d   : > { %3625 = vmatprep.subr.bf16.mxu0 %v3923_v58  ;;  %3587 = vmatprep.subr.bf16.mxu1 %v3924_v59 }
 0x19e   : > { %2568 = vmatmul.mubr.bf16.gmra.mrb[52].mxu0 %v4853_v8 }
 0x19f   : > { %3626 = vmatpush3.bf16.msra.mxu0 %v3925_v1  ;;  %2673 = vmatprep.mubr.bf16.mxu0 %v4708_v6  ;;  %v4884_v6 = vld [vmem:[%s5045_s7 + $0x8] sm:$0xff]  }
 0x1a0   : > { %3588 = vmatpush3.bf16.msra.mxu1 %v3926_v51  ;;  %3627 = vmatprep.subr.bf16.mxu0 %v3927_v61 }
 0x1a1   : > { %3701 = vmatprep.subr.bf16.mxu1 %v3929_v11 }
 0x1a3   : > { %3628 = vmatpush3.bf16.msra.mxu0 %v3928_v12  ;;  %2609 = vmatmul.mubr.bf16.vlgmr.msra.gmra.mrb[48].mxu1 %v1817_v24  ;;  %v1831_v24 = vpack.c.bf16 %v1791_v43, %v4804_v22 }
 0x1a4   : > { %3702 = vmatpush3.bf16.msra.mxu1 %v3929_v11  ;;  %2616 = vmatprep.mubr.bf16.mxu1 %v1830_v2 }
 0x1a5   : > { %3703 = vmatprep.subr.bf16.mxu1 %v3930_v13  ;;  %3725 = vmatprep.subr.bf16.mxu0 %v4875_v41 }
 0x1a6   : > { %2674 = vmatmul.mubr.bf16.vlgmr.msra.gmra.mrb[56].mxu0 %v4765_v15  ;;  %v1853_v15 = vld [vmem:[#allocation2 + $0x91] sm:$0xff] }
 0x1a7   : > { %2681 = vmatprep.mubr.bf16.mxu0 %v4733_v63  ;;  %3726 = vmatpush3.bf16.msra.mxu0 %v4875_v41  ;;  %v4910_v63 = vld [vmem:[%s5045_s7 + $0x18] sm:$0xff]   ;;  %v1857_v17 = vpack.c.bf16 %v1853_v15, %v4717_v54  ;;  %v3280_v54 = vld [vmem:[%s4306_s23 + $0x1e0] sm:$0xff] }
 0x1a8   : > { %3704 = vmatpush3.bf16.msra.mxu1 %v3930_v13  ;;  %3727 = vmatprep.subr.bf16.mxu0 %v4884_v6 }
 0x1a9   : > { %3705 = vmatprep.subr.bf16.mxu1 %v3932_v60 }
 0x1ab   : > { %2617 = vmatmul.mubr.bf16.gmra.mrb[52].mxu1 %v1818_v50  ;;  %3728 = vmatpush3.bf16.msra.mxu0 %v4884_v6  ;;  %v3939_v50 = vld [vmem:[%s5045_s7 + $0x20] sm:$0xff]  }
 0x1ac   : > { %3706 = vmatpush3.bf16.msra.mxu1 %v3932_v60  ;;  %2624 = vmatprep.mubr.bf16.mxu1 %v1831_v24 }
 0x1ad   : > { %3707 = vmatprep.subr.bf16.mxu1 %v3934_v33  ;;  %3729 = vmatprep.subr.bf16.mxu0 %v4900_v28 }
 0x1ae   : > { %2682 = vmatmul.mubr.bf16.gmra.mrb[60].mxu0 %v4802_v38 }
 0x1af   : > { %2689 = vmatprep.mubr.bf16.mxu0 %v4744_v10  ;;  %3730 = vmatpush3.bf16.msra.mxu0 %v4900_v28  ;;  %v3941_v10 = vld [vmem:[%s5045_s7 + $0x28] sm:$0xff]  }
 0x1b0   : > { %3708 = vmatpush3.bf16.msra.mxu1 %v3934_v33  ;;  %3731 = vmatprep.subr.bf16.mxu0 %v4910_v63 }
 0x1b1   : > { %3709 = vmatprep.subr.bf16.mxu1 %v3936_v14 }
 0x1b3   : > { %2625 = vmatmul.mubr.bf16.gmra.mrb[56].mxu1 %v1819_v46  ;;  %3732 = vmatpush3.bf16.msra.mxu0 %v4910_v63  ;;  %v3942_v46 = vld [vmem:[%s5042_s4 + $0x238] sm:$0xff]  }
 0x1b4   : > { %3710 = vmatpush3.bf16.msra.mxu1 %v3936_v14  ;;  %2632 = vmatprep.mubr.bf16.mxu1 %v1832_v7 }
 0x1b5   : > { %3711 = vmatprep.subr.bf16.mxu1 %v3938_v26  ;;  %3733 = vmatprep.subr.bf16.mxu0 %v3939_v50 }
 0x1b6   : > { %2690 = vmatmul.mubr.bf16.gmra.mrb[64].mxu0 %v4839_v55 }
 0x1b7   : > { %2697 = vmatprep.mubr.bf16.mxu0 %v1857_v17  ;;  %3734 = vmatpush3.bf16.msra.mxu0 %v3939_v50 }
 0x1b8   : > { %3712 = vmatpush3.bf16.msra.mxu1 %v3938_v26  ;;  %3735 = vmatprep.subr.bf16.mxu0 %v3941_v10 }
 0x1b9   : > { %3713 = vmatprep.subr.bf16.mxu1 %v3940_v18 }
 0x1bb   : > { %2633 = vmatmul.mubr.bf16.gmra.mrb[60].mxu1 %v1820_v5  ;;  %3736 = vmatpush3.bf16.msra.mxu0 %v3941_v10  ;;  %v2818_v5 = vpack.c.bf16 %v3280_v54, %v3279_v49 }
 0x1bc   : > { %3714 = vmatpush3.bf16.msra.mxu1 %v3940_v18  ;;  %3717 = vmatprep.mubr.bf16.mxu1 %v4784_v27  ;;  %v3282_v27 = vld [vmem:[%s4306_s23 + $0x200] sm:$0xff] }
 0x1bd   : > { %3715 = vmatprep.subr.bf16.mxu1 %v3942_v46  ;;  %3737 = vmatprep.subr.bf16.mxu0 %v3943_v19  ;;  %v2819_v29 = vpack.c.bf16 %v3282_v27, %v3281_v57 }
 0x1be   : > { %2698 = vmatmul.mubr.bf16.gmra.mrb[68].mxu0 %v1845_v20 }
 0x1bf   : > { %3738 = vmatpush3.bf16.msra.mxu0 %v3943_v19  ;;  %3741 = vmatprep.mubr.bf16.mxu0 %v2817_v9 }
 0x1c0   : > { %3716 = vmatpush3.bf16.msra.mxu1 %v3942_v46  ;;  %3739 = vmatprep.subr.bf16.mxu0 %v3944_v21 }
 0x1c1   : > { %3749 = vmatprep.subr.bf16.mxu1 %v4875_v41 }
 0x1c3   : > { %3718 = vmatmul.mubr.bf16.vlgmr.msra.gmra.mrb[64].mxu1 %v4820_v4  ;;  %3740 = vmatpush3.bf16.msra.mxu0 %v3944_v21 }
 0x1c4   : > { %3757 = vmatpush3.bf16.msra.mxu1 %v4875_v41  ;;  %3721 = vmatprep.mubr.bf16.mxu1 %v4853_v8 }
 0x1c5   : > { %3750 = vmatprep.subr.bf16.mxu1 %v4884_v6 }
 0x1c6   : > { %3742 = vmatmul.mubr.bf16.vlgmr.msra.gmra.mrb[72].mxu0 %v2818_v5 }
 0x1c8   : > { %3758 = vmatpush3.bf16.msra.mxu1 %v4884_v6 }
 0x1c9   : > { %3751 = vmatprep.subr.bf16.mxu1 %v4900_v28 }
 0x1cb   : > { %3722 = vmatmul.mubr.bf16.gmra.mrb[68].mxu1 %v1869_v31 }
 0x1cc   : > { %3759 = vmatpush3.bf16.msra.mxu1 %v4900_v28  ;;  %3745 = vmatprep.mubr.bf16.mxu1 %v2819_v29 }
 0x1cd   : > { %3752 = vmatprep.subr.bf16.mxu1 %v4910_v63 }
 0x1d0   : > { %3760 = vmatpush3.bf16.msra.mxu1 %v4910_v63 }
 0x1d1   : > { %3753 = vmatprep.subr.bf16.mxu1 %v3939_v50 }
 0x1d4   : > { %3761 = vmatpush3.bf16.msra.mxu1 %v3939_v50 }
 0x1d5   : > { %3754 = vmatprep.subr.bf16.mxu1 %v3941_v10 }
 0x1d8   : > { %3762 = vmatpush3.bf16.msra.mxu1 %v3941_v10 }
 0x1d9   : > { %3755 = vmatprep.subr.bf16.mxu1 %v3943_v19 }
 0x1dc   : > { %3763 = vmatpush3.bf16.msra.mxu1 %v3943_v19 }
 0x1dd   : > { %3756 = vmatprep.subr.bf16.mxu1 %v3944_v21 }
 0x1e0   : > { %3764 = vmatpush3.bf16.msra.mxu1 %v3944_v21 }
 0x1e3   : > { %3746 = vmatmul.mubr.bf16.vlgmr.msra.gmra.mrb[72].mxu1 %v2820_v35 }
 0x256   : > { %v3509_v37 = vpop.f32.mrb[32].mxu1 }
 0x257   : > { %v3510_v38 = vpop.f32.mrb[33].mxu1 }
 0x258   : > { %v3511_v22 = vadd.f32 %v3510_v38, %v3509_v37  ;;  %v3512_v23 = vpop.f32.mrb[34].mxu1 }
 0x259   : > { %v3549_v36 = vpop.f32.mrb[40].mxu0  ;;  %v3513_v39 = vpop.f32.mrb[35].mxu1 }
 0x25a   : > { %v3514_v42 = vadd.f32 %v3513_v39, %v3512_v23  ;;  %v3550_v16 = vpop.f32.mrb[41].mxu0 }
 0x25b   : > { %v3551_v4 = vadd.f32 %v3550_v16, %v3549_v36  ;;  %v3552_v44 = vpop.f32.mrb[42].mxu0 }
 0x25c   : > { %v3553_v25 = vpop.f32.mrb[43].mxu0 }
 0x25d   : > { %v2546_v45 = vadd.f32 %v3551_v4, %v3511_v22  ;;  %v3554_v47 = vadd.f32 %v3553_v25, %v3552_v44 }
 0x25e   : > { %v3515_v48 = vpop.f32.mrb[36].mxu1 }
 0x25f   : > { %v2549_v40 = vadd.f32 %v3554_v47, %v3514_v42  ;;  %v3516_v53 = vpop.f32.mrb[37].mxu1 }
 0x260   : > { %v3517_v55 = vadd.f32 %v3516_v53, %v3515_v48  ;;  %v3518_v43 = vpop.f32.mrb[38].mxu1 }
 0x261   : > { %v3555_v58 = vpop.f32.mrb[44].mxu0  ;;  %v3519_v59 = vpop.f32.mrb[39].mxu1 }
 0x262   : > { %v3520_v62 = vadd.f32 %v3519_v59, %v3518_v43  ;;  %v3556_v0 = vpop.f32.mrb[45].mxu0 }
 0x263   : > { %v3557_v1 = vadd.f32 %v3556_v0, %v3555_v58  ;;  %v3558_v8 = vpop.f32.mrb[46].mxu0 }
 0x264   : > { %v3559_v51 = vpop.f32.mrb[47].mxu0 }
 0x265   : > { %v2554_v61 = vadd.f32 %v3557_v1, %v3517_v55  ;;  %v3560_v11 = vadd.f32 %v3559_v51, %v3558_v8 }
 0x266   : > { %v3521_v12 = vpop.f32.mrb[40].mxu1 }
 0x267   : > { %v2557_v13 = vadd.f32 %v3560_v11, %v3520_v62  ;;  %v3522_v41 = vpop.f32.mrb[41].mxu1 }
 0x268   : > { %v3523_v2 = vadd.f32 %v3522_v41, %v3521_v12  ;;  %v3524_v6 = vpop.f32.mrb[42].mxu1 }
 0x269   : > { %v3561_v60 = vpop.f32.mrb[48].mxu0  ;;  %v3525_v33 = vpop.f32.mrb[43].mxu1 }
 0x26a   : > { %v3526_v28 = vadd.f32 %v3525_v33, %v3524_v6  ;;  %v3562_v24 = vpop.f32.mrb[49].mxu0 }
 0x26b   : > { %v3563_v63 = vadd.f32 %v3562_v24, %v3561_v60  ;;  %v3564_v14 = vpop.f32.mrb[50].mxu0 }
 0x26c   : > { %v3565_v30 = vpop.f32.mrb[51].mxu0 }
 0x26d   : > { %v2562_v26 = vadd.f32 %v3563_v63, %v3523_v2  ;;  %v3566_v50 = vadd.f32 %v3565_v30, %v3564_v14 }
 0x26e   : > { %v3527_v7 = vpop.f32.mrb[44].mxu1 }
 0x26f   : > { %v2565_v15 = vadd.f32 %v3566_v50, %v3526_v28  ;;  %v3528_v10 = vpop.f32.mrb[45].mxu1 }
 0x270   : > { %v3529_v17 = vadd.f32 %v3528_v10, %v3527_v7  ;;  %v3530_v18 = vpop.f32.mrb[46].mxu1 }
 0x271   : > { %v3567_v52 = vpop.f32.mrb[52].mxu0  ;;  %v3531_v56 = vpop.f32.mrb[47].mxu1 }
 0x272   : > { %v3532_v46 = vadd.f32 %v3531_v56, %v3530_v18  ;;  %v3568_v19 = vpop.f32.mrb[53].mxu0 }
 0x273   : > { %v3569_v9 = vadd.f32 %v3568_v19, %v3567_v52  ;;  %v3570_v20 = vpop.f32.mrb[54].mxu0 }
 0x274   : > { %v3571_v21 = vpop.f32.mrb[55].mxu0 }
 0x275   : > { %v2570_v49 = vadd.f32 %v3569_v9, %v3529_v17  ;;  %v3572_v54 = vadd.f32 %v3571_v21, %v3570_v20 }
 0x276   : > { %v3589_v5 = vpop.f32.mrb[48].mxu1 }
 0x277   : > { %v2573_v57 = vadd.f32 %v3572_v54, %v3532_v46  ;;  %v3590_v27 = vpop.f32.mrb[49].mxu1 }
 0x278   : > { %v3591_v3 = vadd.f32 %v3590_v27, %v3589_v5  ;;  %v3592_v29 = vpop.f32.mrb[50].mxu1 }
 0x279   : > { %v3629_v31 = vpop.f32.mrb[56].mxu0  ;;  %v3593_v32 = vpop.f32.mrb[51].mxu1 }
 0x27a   : > { %v2611_v34 = vadd.f32 %v3591_v3, %v2546_v45  ;;  %v3594_v35 = vadd.f32 %v3593_v32, %v3592_v29  ;;  %v3630_v37 = vpop.f32.mrb[57].mxu0  ;;  %v3275_v3 = vld [vmem:[%s5043_s5] ss:$0 sm:$0xff] }
 0x27b   : > { %v3631_v38 = vadd.f32 %v3630_v37, %v3629_v31  ;;  %v3632_v22 = vpop.f32.mrb[58].mxu0  ;;  %v4979_v32 = vld [vmem:[%s5046_s8] ss:$0 sm:$0xff] }
 0x27c   : > { %v2614_v23 = vadd.f32 %v3594_v35, %v2549_v40  ;;  %v3633_v36 = vpop.f32.mrb[59].mxu0 }
 0x27d   : > { %v3634_v39 = vadd.f32 %v3633_v36, %v3632_v22  ;;  %v2676_v42 = vadd.f32 %v3631_v38, %v2611_v34  ;;  %v4993_v36 = vld [vmem:[%s5047_s9] ss:$0 sm:$0xff] }
 0x27e   : > { %v3595_v16 = vpop.f32.mrb[52].mxu1 }
 0x27f   : > { %v3596_v4 = vpop.f32.mrb[53].mxu1  ;;  %v2679_v44 = vadd.f32 %v3634_v39, %v2614_v23 }
 0x280   : > { %v3597_v25 = vadd.f32 %v3596_v4, %v3595_v16  ;;  %v3598_v47 = vpop.f32.mrb[54].mxu1 }
 0x281   : > { %v3635_v48 = vpop.f32.mrb[60].mxu0  ;;  %v3599_v53 = vpop.f32.mrb[55].mxu1 }
 0x282   : > { %v2619_v55 = vadd.f32 %v3597_v25, %v2554_v61  ;;  %v3600_v43 = vadd.f32 %v3599_v53, %v3598_v47  ;;  %v3636_v58 = vpop.f32.mrb[61].mxu0 }
 0x283   : > { %v3637_v59 = vadd.f32 %v3636_v58, %v3635_v48  ;;  %v3638_v45 = vpop.f32.mrb[62].mxu0 }
 0x284   : > { %v2622_v62 = vadd.f32 %v3600_v43, %v2557_v13  ;;  %v3639_v0 = vpop.f32.mrb[63].mxu0 }
 0x285   : > { %v3640_v1 = vadd.f32 %v3639_v0, %v3638_v45  ;;  %v2684_v8 = vadd.f32 %v3637_v59, %v2619_v55 }
 0x286   : > { %v3601_v40 = vpop.f32.mrb[56].mxu1 }
 0x287   : > { %v3602_v51 = vpop.f32.mrb[57].mxu1  ;;  %v2687_v11 = vadd.f32 %v3640_v1, %v2622_v62 }
 0x288   : > { %v3603_v12 = vadd.f32 %v3602_v51, %v3601_v40  ;;  %v3604_v41 = vpop.f32.mrb[58].mxu1 }
 0x289   : > { %v3641_v2 = vpop.f32.mrb[64].mxu0  ;;  %v3605_v6 = vpop.f32.mrb[59].mxu1 }
 0x28a   : > { %v2627_v60 = vadd.f32 %v3603_v12, %v2562_v26  ;;  %v3606_v33 = vadd.f32 %v3605_v6, %v3604_v41  ;;  %v3642_v28 = vpop.f32.mrb[65].mxu0 }
 0x28b   : > { %v3643_v24 = vadd.f32 %v3642_v28, %v3641_v2  ;;  %v3644_v61 = vpop.f32.mrb[66].mxu0 }
 0x28c   : > { %v2630_v63 = vadd.f32 %v3606_v33, %v2565_v15  ;;  %v3645_v14 = vpop.f32.mrb[67].mxu0 }
 0x28d   : > { %v3646_v30 = vadd.f32 %v3645_v14, %v3644_v61  ;;  %v2692_v50 = vadd.f32 %v3643_v24, %v2627_v60 }
 0x28e   : > { %v3607_v13 = vpop.f32.mrb[60].mxu1 }
 0x28f   : > { %v3608_v7 = vpop.f32.mrb[61].mxu1  ;;  %v4971_v10 = vadd.f32 %v3646_v30, %v2630_v63 }
 0x290   : > { %v3609_v17 = vadd.f32 %v3608_v7, %v3607_v13  ;;  %v3610_v18 = vpop.f32.mrb[62].mxu1 }
 0x291   : > { %v3647_v52 = vpop.f32.mrb[68].mxu0  ;;  %v3611_v56 = vpop.f32.mrb[63].mxu1 }
 0x292   : > { %v2635_v46 = vadd.f32 %v3609_v17, %v2570_v49  ;;  %v3612_v19 = vadd.f32 %v3611_v56, %v3610_v18  ;;  %v3648_v26 = vpop.f32.mrb[69].mxu0 }
 0x293   : > { %v3649_v9 = vadd.f32 %v3648_v26, %v3647_v52  ;;  %v3650_v20 = vpop.f32.mrb[70].mxu0 }
 0x294   : > { %v2638_v21 = vadd.f32 %v3612_v19, %v2573_v57  ;;  %v3651_v54 = vpop.f32.mrb[71].mxu0  ;;  %v3276_v57 = vld [vmem:[%s5044_s6] ss:$0 sm:$0xff] }
 0x295   : > { %v3652_v15 = vadd.f32 %v3651_v54, %v3650_v20  ;;  %v2700_v5 = vadd.f32 %v3649_v9, %v2635_v46 }
 0x296   : > { %v3719_v27 = vpop.f32.mrb[64].mxu1 }
 0x297   : > { %v2749_v29 = vadd.f32 %v3719_v27, %v2684_v8  ;;  %v2740_v31 = vpop.f32.mrb[65].mxu1  ;;  %v2703_v49 = vadd.f32 %v3652_v15, %v2638_v21 }
 0x298   : > { %v2741_v34 = vadd.f32 %v2740_v31, %v2676_v42  ;;  %v3720_v35 = vpop.f32.mrb[66].mxu1 }
 0x299   : > { %v2780_v37 = vmul.f32 %v3275_v3, %v2749_v29  ;;  %v2752_v38 = vadd.f32 %v3720_v35, %v2687_v11  ;;  %v2743_v22 = vpop.f32.mrb[67].mxu1  ;;  %v3743_v23 = vpop.f32.mrb[72].mxu0 }
 0x29a   : > { %v2778_v39 = vmul.f32 %v3275_v3, %v2741_v34  ;;  %v2744_v16 = vadd.f32 %v2743_v22, %v2679_v44  ;;  %v2959_v4 = vmul.f32 %v3743_v23, %v4979_v32  ;;  %v2919_v25 = vpop.f32.mrb[73].mxu0 }
 0x29b   : > { %v2795_v47 = vadd.f32 %v3276_v57, %v2780_v37  ;;  %v2781_v48 = vmul.f32 %v3275_v3, %v2752_v38  ;;  %v2957_v53 = vmul.f32 %v4979_v32, %v2919_v25  ;;  %v3744_v42 = vpop.f32.mrb[74].mxu0 }
 0x29c   : > { %v2793_v55 = vadd.f32 %v3276_v57, %v2778_v39  ;;  %v2779_v43 = vmul.f32 %v3275_v3, %v2744_v16  ;;  %v2974_v58 = vadd.f32 %v4993_v36, %v2959_v4  ;;  %v2960_v59 = vmul.f32 %v3744_v42, %v4979_v32  ;;  %v2922_v44 = vpop.f32.mrb[75].mxu0 }
 0x29d   : > { %v2803_v45 = vmax.f32 %v2795_v47, 0.0  ;;  %v2796_v62 = vadd.f32 %v3276_v57, %v2781_v48  ;;  %v2972_v0 = vadd.f32 %v4993_v36, %v2957_v53  ;;  %v2958_v1 = vmul.f32 %v4979_v32, %v2922_v44 }
 0x29e   : > { %v2801_v8 = vmax.f32 %v2793_v55, 0.0  ;;  %v2794_v40 = vadd.f32 %v3276_v57, %v2779_v43  ;;  %v2975_v51 = vadd.f32 %v4993_v36, %v2960_v59  ;;  %v3723_v11 = vpop.f32.mrb[68].mxu1 }
 0x29f   : > { %v2804_v12 = vmax.f32 %v2796_v62, 0.0  ;;  %v2982_v41 = vadd.f32 %v2974_v58, %v2803_v45  ;;  %v2973_v2 = vadd.f32 %v4993_v36, %v2958_v1  ;;  %v2765_v6 = vadd.f32 %v3723_v11, %v2700_v5  ;;  %v2756_v60 = vpop.f32.mrb[69].mxu1 }
 0x2a0   : > { %v2802_v33 = vmax.f32 %v2794_v40, 0.0  ;;  %v2980_v28 = vadd.f32 %v2972_v0, %v2801_v8  ;;  %v2757_v24 = vadd.f32 %v2756_v60, %v2692_v50  ;;  %v3724_v61 = vpop.f32.mrb[70].mxu1 }
 0x2a1   : > { %v2983_v63 = vadd.f32 %v2975_v51, %v2804_v12  ;;  %v2768_v14 = vadd.f32 %v3724_v61, %v2703_v49  ;;  %v2759_v30 = vpop.f32.mrb[71].mxu1  ;;  %v2784_v52 = vmul.f32 %v3275_v3, %v2765_v6 }
 0x2a2   : > { %v2981_v13 = vadd.f32 %v2973_v2, %v2802_v33  ;;  %v2760_v7 = vadd.f32 %v2759_v30, %v4971_v10  ;;  %v2782_v50 = vmul.f32 %v3275_v3, %v2757_v24 }
 0x2a3   : > { %v3306_v17 = vpack.c.bf16 %v2983_v63, %v2982_v41  ;;  %v2785_v56 = vmul.f32 %v3275_v3, %v2768_v14  ;;  %v2799_v19 = vadd.f32 %v3276_v57, %v2784_v52 }
 0x2a4   : > { %v3301_v18 = vpack.c.bf16 %v2981_v13, %v2980_v28  ;;  %v2783_v46 = vmul.f32 %v3275_v3, %v2760_v7  ;;  %v2797_v26 = vadd.f32 %v3276_v57, %v2782_v50 }
 0x2a5   : > { %3318 = vst [vmem:[%s5013_s26 + $0x8] sm:$0xff] %v3306_v17   ;;  %v2800_v20 = vadd.f32 %v3276_v57, %v2785_v56  ;;  %v2807_v10 = vmax.f32 %v2799_v19, 0.0 }
 0x2a6   : > { %3302 = vst [vmem:[%s5013_s26] sm:$0xff] %v3301_v18   ;;  %v2798_v15 = vadd.f32 %v3276_v57, %v2783_v46  ;;  %v2805_v3 = vmax.f32 %v2797_v26, 0.0 }
 0x2a7   : > { %v2808_v37 = vmax.f32 %v2800_v20, 0.0 }
 0x2a8   : > { %v2806_v22 = vmax.f32 %v2798_v15, 0.0 }
 0x2b6   : > { %v3747_v9 = vpop.f32.mrb[72].mxu1 }
 0x2b7   : > { %v2963_v21 = vmul.f32 %v3747_v9, %v4979_v32  ;;  %v2935_v54 = vpop.f32.mrb[73].mxu1 }
 0x2b8   : > { %v2961_v5 = vmul.f32 %v4979_v32, %v2935_v54  ;;  %v3748_v27 = vpop.f32.mrb[74].mxu1 }
 0x2b9   : > { %v2978_v29 = vadd.f32 %v4993_v36, %v2963_v21  ;;  %v2964_v31 = vmul.f32 %v3748_v27, %v4979_v32  ;;  %v2938_v49 = vpop.f32.mrb[75].mxu1 }
 0x2ba   : > { %v2976_v34 = vadd.f32 %v4993_v36, %v2961_v5  ;;  %v2962_v35 = vmul.f32 %v4979_v32, %v2938_v49 }
 0x2bb   : > { %v2986_v38 = vadd.f32 %v2978_v29, %v2807_v10  ;;  %v2979_v57 = vadd.f32 %v4993_v36, %v2964_v31 }
 0x2bc   : > { %v2984_v23 = vadd.f32 %v2976_v34, %v2805_v3  ;;  %v2977_v39 = vadd.f32 %v4993_v36, %v2962_v35 }
 0x2bd   : > { %v2987_v16 = vadd.f32 %v2979_v57, %v2808_v37 }
 0x2be   : > { %v2985_v4 = vadd.f32 %v2977_v39, %v2806_v22 }
 0x2bf   : > { %v3316_v25 = vpack.c.bf16 %v2987_v16, %v2986_v38 }
 0x2c0   : > { %v3311_v47 = vpack.c.bf16 %v2985_v4, %v2984_v23 }
 0x2c1   : > { %3320 = vst [vmem:[%s5013_s26 + $0x18] sm:$0xff] %v3316_v25  }
 0x2c2   : > { %3319 = vst [vmem:[%s5013_s26 + $0x10] sm:$0xff] %v3311_v47  }
 0x2c3 PF: > { %p17_p9 = scmp.ge.s32.totalorder %s4042_s17, 4   ;;  %s5050_s13 = smov %s3963_s14 }
 0x2c4   : > { %s5051_s14 = smov %s4051_s20  ;;  %s5052_s15 = smov %s4042_s17 }
 0x2c5   :  { %19 = sbr.rel (!%p17_p9) target bundleno = 2 (0x2), region = 140 }

</bundles_post_ra>
